<compile_context>
chip_gen: v5e
topology: v5e:2x2
jax: 0.10.0
libtpu: 0.0.40
codegen_flags: <defaults>
</compile_context>

<pallas_src>
import functools

import jax
import jax.numpy as jnp
from jax.experimental import pallas as pl
from jax.experimental.pallas import tpu as pltpu


# ----------------------------------------------------------------------------
# Fused single-step kernel: input_fc + L GCN layers (BN folded) + out_fc + log_softmax
# ----------------------------------------------------------------------------
def _fused_gcn_kernel(sel_ref,               # scalar prefetch (SMEM): (L,) int32 adj id
                      x_in_ref,              # (N, F_in)            f32
                      a_ref,                 # (2, N, N)            bf16  A_hat stack
                      wfc_ref, bfc_ref,      # (F_in, Hp) f32,      (1, Hp)  f32
                      wconv_ref, bconv_ref,  # (L, Hp, Hp) bf16,    (L, 1, Hp) f32
                      wout_ref, bout_ref,    # (Hp, Cp) bf16,       (1, Cp)  f32
                      o_ref,                 # (N, Cp)              f32
                      *, num_layers, num_classes):
    # --- input_fc: kept in registers and fed straight into layer 0 -----------
    x = (jnp.dot(x_in_ref[...], wfc_ref[...],
                 preferred_element_type=jnp.float32)
         + bfc_ref[...]).astype(jnp.bfloat16)          # padded lanes stay 0

    # --- unrolled GCN layers: relu( A_hat @ x @ W'^T + b' ), BN folded -------
    for l in range(num_layers):
        a = a_ref[sel_ref[l]]                          # (N, N) bf16, dynamic select
        ax = jnp.dot(a, x, preferred_element_type=jnp.float32)
        h = (jnp.dot(ax.astype(jnp.bfloat16), wconv_ref[l],
                     preferred_element_type=jnp.float32)
             + bconv_ref[l])
        x = jnp.maximum(h, 0.0).astype(jnp.bfloat16)   # ReLU; dropout = id (eval)

    # --- out_fc + row-wise log_softmax ---------------------------------------
    z = (jnp.dot(x, wout_ref[...], preferred_element_type=jnp.float32)
         + bout_ref[...])
    # Mask padded class lanes so they do not perturb the softmax (f32 only:
    # -1e30 would overflow to -inf in bf16).
    col = jax.lax.broadcasted_iota(jnp.int32, z.shape, dimension=1)
    z = jnp.where(col < num_classes, z, -1e30)
    m = jnp.max(z, axis=-1, keepdims=True)
    lse = m + jnp.log(jnp.sum(jnp.exp(z - m), axis=-1, keepdims=True))
    o_ref[...] = z - lse


# ----------------------------------------------------------------------------
# pallas_call wrapper
# ----------------------------------------------------------------------------
def gcn_fused_forward(adj_sel, x, a_stack, prep, *, num_layers, num_classes):
    n, f_in = x.shape
    hp = prep["wconv_t"].shape[-1]     # padded hidden (multiple of 128)
    cp = prep["wout_t"].shape[-1]      # padded classes (multiple of 128)

    flops = (2 * n * f_in * hp
             + num_layers * (2 * n * n * hp + 2 * n * hp * hp)
             + 2 * n * hp * cp)
    bytes_accessed = (x.size * 4 + a_stack.size * 2
                      + prep["wfc_t"].size * 4 + prep["bfc"].size * 4
                      + prep["wconv_t"].size * 2 + prep["bconv"].size * 4
                      + prep["wout_t"].size * 2 + prep["bout"].size * 4
                      + n * cp * 4)

    kernel = functools.partial(_fused_gcn_kernel,
                               num_layers=num_layers, num_classes=num_classes)
    out_p = pl.pallas_call(
        kernel,
        out_shape=jax.ShapeDtypeStruct((n, cp), jnp.float32),
        grid_spec=pltpu.PrefetchScalarGridSpec(
            num_scalar_prefetch=1,
            grid=(1,),                                               # single step
            in_specs=[
                pl.BlockSpec((n, f_in), lambda i, sel: (0, 0)),          # x_in
                pl.BlockSpec((2, n, n), lambda i, sel: (0, 0, 0)),       # A_hat stack
                pl.BlockSpec((f_in, hp), lambda i, sel: (0, 0)),         # Wfc^T
                pl.BlockSpec((1, hp), lambda i, sel: (0, 0)),            # bfc
                pl.BlockSpec((num_layers, hp, hp),
                             lambda i, sel: (0, 0, 0)),                  # Wconv^T (folded)
                pl.BlockSpec((num_layers, 1, hp),
                             lambda i, sel: (0, 0, 0)),                  # bconv (folded)
                pl.BlockSpec((hp, cp), lambda i, sel: (0, 0)),           # Wout^T
                pl.BlockSpec((1, cp), lambda i, sel: (0, 0)),            # bout
            ],
            out_specs=pl.BlockSpec((n, cp), lambda i, sel: (0, 0)),
        ),
        compiler_params=pltpu.CompilerParams(
            dimension_semantics=("arbitrary",),
            # Actual VMEM use here is < 1 MiB; 32 MiB is safe on v5e/v6e/v7x.
            vmem_limit_bytes=32 * 1024 * 1024,
        ),
        cost_estimate=pl.CostEstimate(flops=flops,
                                      transcendentals=n * (cp + 1),
                                      bytes_accessed=bytes_accessed),
    )(adj_sel, x, a_stack, prep["wfc_t"], prep["bfc"],
      prep["wconv_t"], prep["bconv"], prep["wout_t"], prep["bout"])
    return out_p[:, :num_classes]


# ----------------------------------------------------------------------------
# Glue: normalization, BN folding, padding, parameter prep (done once)
# ----------------------------------------------------------------------------
def _round_up(x, m):
    return ((x + m - 1) // m) * m


def _pad_to(x, shape):
    return jnp.pad(x, [(0, s - d) for d, s in zip(x.shape, shape)])


def gcn_normalize(adj):
    """A_hat = D^{-1/2} (A + I) D^{-1/2}."""
    n = adj.shape[0]
    a_hat = adj + jnp.eye(n, dtype=adj.dtype)
    deg = jnp.sum(a_hat, axis=1)
    d = jax.lax.rsqrt(jnp.maximum(deg, 1e-12))
    return a_hat * d[:, None] * d[None, :]


def init_params(key, num_node_features, hidden, num_classes, num_layers):
    ks = jax.random.split(key, 2 * num_layers + 4)
    p = {}
    scale_in = 1.0 / jnp.sqrt(num_node_features)
    p["input_fc_w"] = jax.random.uniform(
        ks[0], (hidden, num_node_features), jnp.float32, -scale_in, scale_in)
    p["input_fc_b"] = jax.random.uniform(
        ks[1], (hidden,), jnp.float32, -scale_in, scale_in)
    scale_h = 1.0 / jnp.sqrt(hidden)
    p["convs"], p["bns"] = [], []
    for i in range(num_layers):
        w = jax.random.uniform(
            ks[2 + 2 * i], (hidden, hidden), jnp.float32, -scale_h, scale_h)
        b = jax.random.uniform(
            ks[3 + 2 * i], (hidden,), jnp.float32, -scale_h, scale_h)
        p["convs"].append({"w": w, "b": b})
        # fresh BatchNorm1d: gamma=1, beta=0, running_mean=0, running_var=1
        p["bns"].append({
            "gamma": jnp.ones((hidden,), jnp.float32),
            "beta": jnp.zeros((hidden,), jnp.float32),
            "mean": jnp.zeros((hidden,), jnp.float32),
            "var": jnp.ones((hidden,), jnp.float32),
        })
    p["out_fc_w"] = jax.random.uniform(
        ks[-2], (num_classes, hidden), jnp.float32, -scale_h, scale_h)
    p["out_fc_b"] = jax.random.uniform(
        ks[-1], (num_classes,), jnp.float32, -scale_h, scale_h)
    return p


def prepare_params(params, *, hidden, num_classes):
    """One-time prep: fold eval BN into conv W/b, pre-transpose, pad feature
    dims to a lane-dense multiple of 128, cast MXU operands to bf16."""
    hp = _round_up(max(hidden, 1), 128)
    cp = _round_up(max(num_classes, 1), 128)
    eps = 1e-5

    f_in = params["input_fc_w"].shape[1]
    wfc_t = _pad_to(params["input_fc_w"].T.astype(jnp.float32), (f_in, hp))
    bfc = _pad_to(params["input_fc_b"], (hp,)).reshape(1, hp).astype(jnp.float32)

    wconv, bconv = [], []
    for conv, bn in zip(params["convs"], params["bns"]):
        scale = bn["gamma"] * jax.lax.rsqrt(bn["var"] + eps)      # (H,)
        w_fold = conv["w"] * scale[:, None]                       # torch (out,in)
        b_fold = (conv["b"] - bn["mean"]) * scale + bn["beta"]
        wconv.append(_pad_to(w_fold.T, (hp, hp)).astype(jnp.bfloat16))
        bconv.append(_pad_to(b_fold, (hp,)).reshape(1, hp).astype(jnp.float32))
    wconv_t = jnp.stack(wconv)                                    # (L, Hp, Hp) bf16
    bconv_s = jnp.stack(bconv)                                    # (L, 1, Hp)  f32

    wout_t = _pad_to(params["out_fc_w"].T, (hp, cp)).astype(jnp.bfloat16)
    bout = _pad_to(params["out_fc_b"], (cp,)).reshape(1, cp).astype(jnp.float32)

    return {"wfc_t": wfc_t, "bfc": bfc, "wconv_t": wconv_t, "bconv": bconv_s,
            "wout_t": wout_t, "bout": bout}


@functools.partial(jax.jit, static_argnames=("num_layers", "num_classes"))
def gcn_net_forward(prep, x, sample1_adj, sample2_adj, adj_sel, *,
                    num_layers, num_classes):
    a1 = gcn_normalize(sample1_adj).astype(jnp.bfloat16)
    a2 = gcn_normalize(sample2_adj).astype(jnp.bfloat16)
    a_stack = jnp.stack([a1, a2])                # (2, N, N) bf16
    return gcn_fused_forward(adj_sel, x.astype(jnp.float32), a_stack, prep,
                             num_layers=num_layers, num_classes=num_classes)


# ----------------------------------------------------------------------------
# Pure-JAX f32 reference (eval-mode semantics) for tolerance checking
# ----------------------------------------------------------------------------
def gcn_ref_forward(params, x, sample1_adj, sample2_adj, *, num_layers):
    eps = 1e-5
    a1 = gcn_normalize(sample1_adj)
    a2 = gcn_normalize(sample2_adj)
    h = x @ params["input_fc_w"].T + params["input_fc_b"]
    for i in range(num_layers):
        a = a1 if i < num_layers / 2 else a2
        conv, bn = params["convs"][i], params["bns"][i]
        h = a @ (h @ conv["w"].T) + conv["b"]
        scale = bn["gamma"] * jax.lax.rsqrt(bn["var"] + eps)
        h = (h - bn["mean"]) * scale + bn["beta"]
        h = jnp.maximum(h, 0.0)                 # dropout = identity (eval)
    z = h @ params["out_fc_w"].T + params["out_fc_b"]
    return jax.nn.log_softmax(z, axis=1)


# ----------------------------------------------------------------------------
if __name__ == "__main__":
    N_NODES = 128        # number of nodes
    F_IN = 8             # ogbn-proteins node features
    HIDDEN = 32
    N_CLASSES = 16
    N_LAYERS = 4

    key = jax.random.PRNGKey(0)
    k_x, k_a1, k_a2, k_p = jax.random.split(key, 4)

    x = jax.random.normal(k_x, (N_NODES, F_IN), jnp.float32)

    def random_adj(k):
        a = (jax.random.uniform(k, (N_NODES, N_NODES)) < 0.05).astype(jnp.float32)
        a = jnp.maximum(a, a.T)                  # symmetric
        return a * (1.0 - jnp.eye(N_NODES, dtype=jnp.float32))

    sample1_adj = random_adj(k_a1)
    sample2_adj = random_adj(k_a2)

    params = init_params(k_p, F_IN, HIDDEN, N_CLASSES, N_LAYERS)
    prep = prepare_params(params, hidden=HIDDEN, num_classes=N_CLASSES)

    # layer i uses sample1_adj if i < L/2 else sample2_adj (reference semantics)
    adj_sel = jnp.array([0 if i < N_LAYERS / 2 else 1 for i in range(N_LAYERS)],
                        dtype=jnp.int32)

    out = gcn_net_forward(prep, x, sample1_adj, sample2_adj, adj_sel,
                          num_layers=N_LAYERS, num_classes=N_CLASSES)
    out = jax.block_until_ready(out)

    assert out.shape == (N_NODES, N_CLASSES)
    # log_softmax rows should sum to ~1 after exp
    row_sums = jnp.exp(out).sum(axis=1)
    assert bool(jnp.all(jnp.abs(row_sums - 1.0) < 1e-3))

    # Tolerance-check against the pure-JAX f32 reference (bf16 MXU path adds
    # small per-layer rounding error; expect <~3e-2 absolute after 4 layers).
    ref = gcn_ref_forward(params, x, sample1_adj, sample2_adj,
                          num_layers=N_LAYERS)
    max_err = float(jnp.max(jnp.abs(out - ref)))
    assert max_err < 1e-1, f"max abs error vs f32 reference too large: {max_err}"

    print("KERNEL_OK")
</pallas_src>

<mosaic_0001>
module attributes {stable_mosaic.version = 11 : i64} {
  func.func @_fused_gcn_kernel(%arg0: i32, %arg1: memref<4xi32, #tpu.memory_space<smem>>, %arg2: memref<128x8xf32, #tpu.memory_space<vmem>>, %arg3: memref<2x128x128xbf16, #tpu.memory_space<vmem>>, %arg4: memref<8x128xf32, #tpu.memory_space<vmem>>, %arg5: memref<1x128xf32, #tpu.memory_space<vmem>>, %arg6: memref<4x128x128xbf16, #tpu.memory_space<vmem>>, %arg7: memref<4x1x128xf32, #tpu.memory_space<vmem>>, %arg8: memref<128x128xbf16, #tpu.memory_space<vmem>>, %arg9: memref<1x128xf32, #tpu.memory_space<vmem>>, %arg10: memref<128x128xf32, #tpu.memory_space<vmem>>) attributes {dimension_semantics = [#tpu.dimension_semantics<arbitrary>], iteration_bounds = array<i64: 1>, scalar_prefetch = 1 : i64, scratch_operands = 0 : i64, tpu.core_type = #tpu.core_type<tc>, window_params = [{pipeline_mode = #tpu.pipeline_mode<synchronous>, transform_indices = @transform_0, window_bounds = array<i64: 128, 8>}, {pipeline_mode = #tpu.pipeline_mode<synchronous>, transform_indices = @transform_1, window_bounds = array<i64: 2, 128, 128>}, {pipeline_mode = #tpu.pipeline_mode<synchronous>, transform_indices = @transform_2, window_bounds = array<i64: 8, 128>}, {pipeline_mode = #tpu.pipeline_mode<synchronous>, transform_indices = @transform_3, window_bounds = array<i64: 1, 128>}, {pipeline_mode = #tpu.pipeline_mode<synchronous>, transform_indices = @transform_4, window_bounds = array<i64: 4, 128, 128>}, {pipeline_mode = #tpu.pipeline_mode<synchronous>, transform_indices = @transform_5, window_bounds = array<i64: 4, 1, 128>}, {pipeline_mode = #tpu.pipeline_mode<synchronous>, transform_indices = @transform_6, window_bounds = array<i64: 128, 128>}, {pipeline_mode = #tpu.pipeline_mode<synchronous>, transform_indices = @transform_7, window_bounds = array<i64: 1, 128>}, {pipeline_mode = #tpu.pipeline_mode<synchronous>, transform_indices = @transform_8, window_bounds = array<i64: 128, 128>}]} {
    %c0 = arith.constant 0 : index
    %c0_0 = arith.constant 0 : index
    %0 = vector.load %arg2[%c0, %c0_0] : memref<128x8xf32, #tpu.memory_space<vmem>>, vector<128x8xf32>
    %c0_1 = arith.constant 0 : index
    %c0_2 = arith.constant 0 : index
    %1 = vector.load %arg4[%c0_1, %c0_2] : memref<8x128xf32, #tpu.memory_space<vmem>>, vector<8x128xf32>
    %cst = arith.constant dense<0.000000e+00> : vector<128x128xf32>
    %2 = tpu.matmul %0, %1, %cst {dimension_numbers = #tpu.dot_dimension_numbers<[1], [0], [0], [1], [0, 0, 1, 1], [], []>} : vector<128x8xf32>, vector<8x128xf32>, vector<128x128xf32> -> vector<128x128xf32>
    %c0_3 = arith.constant 0 : index
    %c0_4 = arith.constant 0 : index
    %3 = vector.load %arg5[%c0_3, %c0_4] : memref<1x128xf32, #tpu.memory_space<vmem>>, vector<1x128xf32>
    %4 = vector.broadcast %3 : vector<1x128xf32> to vector<128x128xf32>
    %5 = arith.addf %2, %4 : vector<128x128xf32>
    %6 = arith.truncf %5 : vector<128x128xf32> to vector<128x128xbf16>
    %c0_5 = arith.constant 0 : index
    %7 = memref.load %arg1[%c0_5] : memref<4xi32, #tpu.memory_space<smem>>
    %8 = arith.index_cast %7 : i32 to index
    %c0_6 = arith.constant 0 : index
    %c0_7 = arith.constant 0 : index
    %9 = vector.load %arg3[%8, %c0_6, %c0_7] : memref<2x128x128xbf16, #tpu.memory_space<vmem>>, vector<1x128x128xbf16>
    %10 = vector.shape_cast %9 : vector<1x128x128xbf16> to vector<128x128xbf16>
    %cst_8 = arith.constant dense<0.000000e+00> : vector<128x128xf32>
    %11 = tpu.matmul %10, %6, %cst_8 {dimension_numbers = #tpu.dot_dimension_numbers<[1], [0], [0], [1], [0, 0, 1, 1], [], []>} : vector<128x128xbf16>, vector<128x128xbf16>, vector<128x128xf32> -> vector<128x128xf32>
    %12 = arith.truncf %11 : vector<128x128xf32> to vector<128x128xbf16>
    %c0_9 = arith.constant 0 : index
    %c0_10 = arith.constant 0 : index
    %c0_11 = arith.constant 0 : index
    %13 = vector.load %arg6[%c0_9, %c0_10, %c0_11] : memref<4x128x128xbf16, #tpu.memory_space<vmem>>, vector<1x128x128xbf16>
    %14 = vector.shape_cast %13 : vector<1x128x128xbf16> to vector<128x128xbf16>
    %cst_12 = arith.constant dense<0.000000e+00> : vector<128x128xf32>
    %15 = tpu.matmul %12, %14, %cst_12 {dimension_numbers = #tpu.dot_dimension_numbers<[1], [0], [0], [1], [0, 0, 1, 1], [], []>} : vector<128x128xbf16>, vector<128x128xbf16>, vector<128x128xf32> -> vector<128x128xf32>
    %c0_13 = arith.constant 0 : index
    %c0_14 = arith.constant 0 : index
    %c0_15 = arith.constant 0 : index
    %16 = vector.load %arg7[%c0_13, %c0_14, %c0_15] : memref<4x1x128xf32, #tpu.memory_space<vmem>>, vector<1x1x128xf32>
    %17 = vector.shape_cast %16 : vector<1x1x128xf32> to vector<1x128xf32>
    %18 = vector.broadcast %17 : vector<1x128xf32> to vector<128x128xf32>
    %19 = arith.addf %15, %18 : vector<128x128xf32>
    %cst_16 = arith.constant 0.000000e+00 : f32
    %20 = vector.broadcast %cst_16 : f32 to vector<128x128xf32>
    %21 = arith.maximumf %19, %20 : vector<128x128xf32>
    %22 = arith.truncf %21 : vector<128x128xf32> to vector<128x128xbf16>
    %c1 = arith.constant 1 : index
    %23 = memref.load %arg1[%c1] : memref<4xi32, #tpu.memory_space<smem>>
    %24 = arith.index_cast %23 : i32 to index
    %c0_17 = arith.constant 0 : index
    %c0_18 = arith.constant 0 : index
    %25 = vector.load %arg3[%24, %c0_17, %c0_18] : memref<2x128x128xbf16, #tpu.memory_space<vmem>>, vector<1x128x128xbf16>
    %26 = vector.shape_cast %25 : vector<1x128x128xbf16> to vector<128x128xbf16>
    %cst_19 = arith.constant dense<0.000000e+00> : vector<128x128xf32>
    %27 = tpu.matmul %26, %22, %cst_19 {dimension_numbers = #tpu.dot_dimension_numbers<[1], [0], [0], [1], [0, 0, 1, 1], [], []>} : vector<128x128xbf16>, vector<128x128xbf16>, vector<128x128xf32> -> vector<128x128xf32>
    %28 = arith.truncf %27 : vector<128x128xf32> to vector<128x128xbf16>
    %c1_20 = arith.constant 1 : index
    %c0_21 = arith.constant 0 : index
    %c0_22 = arith.constant 0 : index
    %29 = vector.load %arg6[%c1_20, %c0_21, %c0_22] : memref<4x128x128xbf16, #tpu.memory_space<vmem>>, vector<1x128x128xbf16>
    %30 = vector.shape_cast %29 : vector<1x128x128xbf16> to vector<128x128xbf16>
    %cst_23 = arith.constant dense<0.000000e+00> : vector<128x128xf32>
    %31 = tpu.matmul %28, %30, %cst_23 {dimension_numbers = #tpu.dot_dimension_numbers<[1], [0], [0], [1], [0, 0, 1, 1], [], []>} : vector<128x128xbf16>, vector<128x128xbf16>, vector<128x128xf32> -> vector<128x128xf32>
    %c1_24 = arith.constant 1 : index
    %c0_25 = arith.constant 0 : index
    %c0_26 = arith.constant 0 : index
    %32 = vector.load %arg7[%c1_24, %c0_25, %c0_26] : memref<4x1x128xf32, #tpu.memory_space<vmem>>, vector<1x1x128xf32>
    %33 = vector.shape_cast %32 : vector<1x1x128xf32> to vector<1x128xf32>
    %34 = vector.broadcast %33 : vector<1x128xf32> to vector<128x128xf32>
    %35 = arith.addf %31, %34 : vector<128x128xf32>
    %cst_27 = arith.constant 0.000000e+00 : f32
    %36 = vector.broadcast %cst_27 : f32 to vector<128x128xf32>
    %37 = arith.maximumf %35, %36 : vector<128x128xf32>
    %38 = arith.truncf %37 : vector<128x128xf32> to vector<128x128xbf16>
    %c2 = arith.constant 2 : index
    %39 = memref.load %arg1[%c2] : memref<4xi32, #tpu.memory_space<smem>>
    %40 = arith.index_cast %39 : i32 to index
    %c0_28 = arith.constant 0 : index
    %c0_29 = arith.constant 0 : index
    %41 = vector.load %arg3[%40, %c0_28, %c0_29] : memref<2x128x128xbf16, #tpu.memory_space<vmem>>, vector<1x128x128xbf16>
    %42 = vector.shape_cast %41 : vector<1x128x128xbf16> to vector<128x128xbf16>
    %cst_30 = arith.constant dense<0.000000e+00> : vector<128x128xf32>
    %43 = tpu.matmul %42, %38, %cst_30 {dimension_numbers = #tpu.dot_dimension_numbers<[1], [0], [0], [1], [0, 0, 1, 1], [], []>} : vector<128x128xbf16>, vector<128x128xbf16>, vector<128x128xf32> -> vector<128x128xf32>
    %44 = arith.truncf %43 : vector<128x128xf32> to vector<128x128xbf16>
    %c2_31 = arith.constant 2 : index
    %c0_32 = arith.constant 0 : index
    %c0_33 = arith.constant 0 : index
    %45 = vector.load %arg6[%c2_31, %c0_32, %c0_33] : memref<4x128x128xbf16, #tpu.memory_space<vmem>>, vector<1x128x128xbf16>
    %46 = vector.shape_cast %45 : vector<1x128x128xbf16> to vector<128x128xbf16>
    %cst_34 = arith.constant dense<0.000000e+00> : vector<128x128xf32>
    %47 = tpu.matmul %44, %46, %cst_34 {dimension_numbers = #tpu.dot_dimension_numbers<[1], [0], [0], [1], [0, 0, 1, 1], [], []>} : vector<128x128xbf16>, vector<128x128xbf16>, vector<128x128xf32> -> vector<128x128xf32>
    %c2_35 = arith.constant 2 : index
    %c0_36 = arith.constant 0 : index
    %c0_37 = arith.constant 0 : index
    %48 = vector.load %arg7[%c2_35, %c0_36, %c0_37] : memref<4x1x128xf32, #tpu.memory_space<vmem>>, vector<1x1x128xf32>
    %49 = vector.shape_cast %48 : vector<1x1x128xf32> to vector<1x128xf32>
    %50 = vector.broadcast %49 : vector<1x128xf32> to vector<128x128xf32>
    %51 = arith.addf %47, %50 : vector<128x128xf32>
    %cst_38 = arith.constant 0.000000e+00 : f32
    %52 = vector.broadcast %cst_38 : f32 to vector<128x128xf32>
    %53 = arith.maximumf %51, %52 : vector<128x128xf32>
    %54 = arith.truncf %53 : vector<128x128xf32> to vector<128x128xbf16>
    %c3 = arith.constant 3 : index
    %55 = memref.load %arg1[%c3] : memref<4xi32, #tpu.memory_space<smem>>
    %56 = arith.index_cast %55 : i32 to index
    %c0_39 = arith.constant 0 : index
    %c0_40 = arith.constant 0 : index
    %57 = vector.load %arg3[%56, %c0_39, %c0_40] : memref<2x128x128xbf16, #tpu.memory_space<vmem>>, vector<1x128x128xbf16>
    %58 = vector.shape_cast %57 : vector<1x128x128xbf16> to vector<128x128xbf16>
    %cst_41 = arith.constant dense<0.000000e+00> : vector<128x128xf32>
    %59 = tpu.matmul %58, %54, %cst_41 {dimension_numbers = #tpu.dot_dimension_numbers<[1], [0], [0], [1], [0, 0, 1, 1], [], []>} : vector<128x128xbf16>, vector<128x128xbf16>, vector<128x128xf32> -> vector<128x128xf32>
    %60 = arith.truncf %59 : vector<128x128xf32> to vector<128x128xbf16>
    %c3_42 = arith.constant 3 : index
    %c0_43 = arith.constant 0 : index
    %c0_44 = arith.constant 0 : index
    %61 = vector.load %arg6[%c3_42, %c0_43, %c0_44] : memref<4x128x128xbf16, #tpu.memory_space<vmem>>, vector<1x128x128xbf16>
    %62 = vector.shape_cast %61 : vector<1x128x128xbf16> to vector<128x128xbf16>
    %cst_45 = arith.constant dense<0.000000e+00> : vector<128x128xf32>
    %63 = tpu.matmul %60, %62, %cst_45 {dimension_numbers = #tpu.dot_dimension_numbers<[1], [0], [0], [1], [0, 0, 1, 1], [], []>} : vector<128x128xbf16>, vector<128x128xbf16>, vector<128x128xf32> -> vector<128x128xf32>
    %c3_46 = arith.constant 3 : index
    %c0_47 = arith.constant 0 : index
    %c0_48 = arith.constant 0 : index
    %64 = vector.load %arg7[%c3_46, %c0_47, %c0_48] : memref<4x1x128xf32, #tpu.memory_space<vmem>>, vector<1x1x128xf32>
    %65 = vector.shape_cast %64 : vector<1x1x128xf32> to vector<1x128xf32>
    %66 = vector.broadcast %65 : vector<1x128xf32> to vector<128x128xf32>
    %67 = arith.addf %63, %66 : vector<128x128xf32>
    %cst_49 = arith.constant 0.000000e+00 : f32
    %68 = vector.broadcast %cst_49 : f32 to vector<128x128xf32>
    %69 = arith.maximumf %67, %68 : vector<128x128xf32>
    %70 = arith.truncf %69 : vector<128x128xf32> to vector<128x128xbf16>
    %c0_50 = arith.constant 0 : index
    %c0_51 = arith.constant 0 : index
    %71 = vector.load %arg8[%c0_50, %c0_51] : memref<128x128xbf16, #tpu.memory_space<vmem>>, vector<128x128xbf16>
    %cst_52 = arith.constant dense<0.000000e+00> : vector<128x128xf32>
    %72 = tpu.matmul %70, %71, %cst_52 {dimension_numbers = #tpu.dot_dimension_numbers<[1], [0], [0], [1], [0, 0, 1, 1], [], []>} : vector<128x128xbf16>, vector<128x128xbf16>, vector<128x128xf32> -> vector<128x128xf32>
    %c0_53 = arith.constant 0 : index
    %c0_54 = arith.constant 0 : index
    %73 = vector.load %arg9[%c0_53, %c0_54] : memref<1x128xf32, #tpu.memory_space<vmem>>, vector<1x128xf32>
    %74 = vector.broadcast %73 : vector<1x128xf32> to vector<128x128xf32>
    %75 = arith.addf %72, %74 : vector<128x128xf32>
    %76 = tpu.iota {dimensions = array<i32: 1>} : vector<128x128xi32>
    %c16_i32 = arith.constant 16 : i32
    %77 = vector.broadcast %c16_i32 : i32 to vector<128x128xi32>
    %78 = arith.cmpi slt, %76, %77 : vector<128x128xi32>
    %cst_55 = arith.constant -1.000000e+30 : f32
    %79 = vector.broadcast %cst_55 : f32 to vector<128x128xf32>
    %80 = arith.select %78, %75, %79 : vector<128x128xi1>, vector<128x128xf32>
    %cst_56 = arith.constant dense<0xFF800000> : vector<128xf32>
    %81 = vector.multi_reduction <maximumf>, %80, %cst_56 [1] : vector<128x128xf32> to vector<128xf32>
    %82 = vector.shape_cast %81 : vector<128xf32> to vector<128x1xf32>
    %83 = vector.broadcast %82 : vector<128x1xf32> to vector<128x128xf32>
    %84 = arith.subf %80, %83 : vector<128x128xf32>
    %85 = math.exp %84 : vector<128x128xf32>
    %cst_57 = arith.constant dense<0.000000e+00> : vector<128xf32>
    %86 = vector.multi_reduction <add>, %85, %cst_57 [1] : vector<128x128xf32> to vector<128xf32>
    %87 = vector.shape_cast %86 : vector<128xf32> to vector<128x1xf32>
    %88 = math.log %87 : vector<128x1xf32>
    %89 = arith.addf %82, %88 : vector<128x1xf32>
    %90 = vector.broadcast %89 : vector<128x1xf32> to vector<128x128xf32>
    %91 = arith.subf %80, %90 : vector<128x128xf32>
    %c0_58 = arith.constant 0 : index
    %c0_59 = arith.constant 0 : index
    %92 = vector.load %arg10[%c0_58, %c0_59] : memref<128x128xf32, #tpu.memory_space<vmem>>, vector<128x128xf32>
    tpu.vector_store %arg10[%c0_58, %c0_59], %91 {strides = array<i32>} : memref<128x128xf32, #tpu.memory_space<vmem>>, vector<128x128xf32>,
    return
  }
  func.func @transform_0(%arg0: i32, %arg1: memref<4xi32, #tpu.memory_space<smem>>) -> (i32, i32) {
    %c0_i32 = arith.constant 0 : i32
    %c0_i32_0 = arith.constant 0 : i32
    %c0_i32_1 = arith.constant 0 : i32
    return %c0_i32, %c0_i32_0 : i32, i32
  }
  func.func @transform_1(%arg0: i32, %arg1: memref<4xi32, #tpu.memory_space<smem>>) -> (i32, i32, i32) {
    %c0_i32 = arith.constant 0 : i32
    %c0_i32_0 = arith.constant 0 : i32
    %c0_i32_1 = arith.constant 0 : i32
    %c0_i32_2 = arith.constant 0 : i32
    return %c0_i32, %c0_i32_0, %c0_i32_1 : i32, i32, i32
  }
  func.func @transform_2(%arg0: i32, %arg1: memref<4xi32, #tpu.memory_space<smem>>) -> (i32, i32) {
    %c0_i32 = arith.constant 0 : i32
    %c0_i32_0 = arith.constant 0 : i32
    %c0_i32_1 = arith.constant 0 : i32
    return %c0_i32, %c0_i32_0 : i32, i32
  }
  func.func @transform_3(%arg0: i32, %arg1: memref<4xi32, #tpu.memory_space<smem>>) -> (i32, i32) {
    %c0_i32 = arith.constant 0 : i32
    %c0_i32_0 = arith.constant 0 : i32
    %c0_i32_1 = arith.constant 0 : i32
    return %c0_i32, %c0_i32_0 : i32, i32
  }
  func.func @transform_4(%arg0: i32, %arg1: memref<4xi32, #tpu.memory_space<smem>>) -> (i32, i32, i32) {
    %c0_i32 = arith.constant 0 : i32
    %c0_i32_0 = arith.constant 0 : i32
    %c0_i32_1 = arith.constant 0 : i32
    %c0_i32_2 = arith.constant 0 : i32
    return %c0_i32, %c0_i32_0, %c0_i32_1 : i32, i32, i32
  }
  func.func @transform_5(%arg0: i32, %arg1: memref<4xi32, #tpu.memory_space<smem>>) -> (i32, i32, i32) {
    %c0_i32 = arith.constant 0 : i32
    %c0_i32_0 = arith.constant 0 : i32
    %c0_i32_1 = arith.constant 0 : i32
    %c0_i32_2 = arith.constant 0 : i32
    return %c0_i32, %c0_i32_0, %c0_i32_1 : i32, i32, i32
  }
  func.func @transform_6(%arg0: i32, %arg1: memref<4xi32, #tpu.memory_space<smem>>) -> (i32, i32) {
    %c0_i32 = arith.constant 0 : i32
    %c0_i32_0 = arith.constant 0 : i32
    %c0_i32_1 = arith.constant 0 : i32
    return %c0_i32, %c0_i32_0 : i32, i32
  }
  func.func @transform_7(%arg0: i32, %arg1: memref<4xi32, #tpu.memory_space<smem>>) -> (i32, i32) {
    %c0_i32 = arith.constant 0 : i32
    %c0_i32_0 = arith.constant 0 : i32
    %c0_i32_1 = arith.constant 0 : i32
    return %c0_i32, %c0_i32_0 : i32, i32
  }
  func.func @transform_8(%arg0: i32, %arg1: memref<4xi32, #tpu.memory_space<smem>>) -> (i32, i32) {
    %c0_i32 = arith.constant 0 : i32
    %c0_i32_0 = arith.constant 0 : i32
    %c0_i32_1 = arith.constant 0 : i32
    return %c0_i32, %c0_i32_0 : i32, i32
  }
}

</mosaic_0001>

<bundles_post_ra>
// kernel: gcn_net_forward.1
= control target key start
LH: loop header
LB: loop body
LE: loop exit
PB: predicated region body
PF: predicated region fallthrough
CT: control target
= control target key end

     0   :  { %s2135_s12 = smov [#allocation3]   ;;  %s2681_s0 = inlined_call_operand.vmem [shape: s32[4], index: 0, kind: input, shape index: {}]   ;;  %s2682_s1 = inlined_call_operand.vmem [shape: f32[128,8], index: 1, kind: input, shape index: {}]   ;;  %s2683_s2 = inlined_call_operand.vmem [shape: bf16[2,128,128], index: 2, kind: input, shape index: {}]   ;;  %s2684_s3 = inlined_call_operand.vmem [shape: f32[8,128], index: 3, kind: input, shape index: {}]   ;;  %s2685_s4 = inlined_call_operand.vmem [shape: f32[1,128], index: 4, kind: input, shape index: {}]   ;;  %s2686_s5 = inlined_call_operand.vmem [shape: bf16[4,128,128], index: 5, kind: input, shape index: {}]   ;;  %s2687_s6 = inlined_call_operand.vmem [shape: f32[4,1,128], index: 6, kind: input, shape index: {}]   ;;  %s2688_s7 = inlined_call_operand.vmem [shape: bf16[128,128], index: 7, kind: input, shape index: {}]   ;;  %s2689_s8 = inlined_call_operand.vmem [shape: f32[1,128], index: 8, kind: input, shape index: {}]   ;;  %s2690_s9 = inlined_call_operand.vmem [shape: f32[128,128], index: 9, kind: output, shape index: {}]  }
   0x1   :  { %s15_s11 = sshll.u32 %s2681_s0, 4  ;;  %s16_s11 = int_to_ptr.vmem [resolvable:$true] %s15_s11 }
   0x2   :  { %18 = dma.vmem_to_smem %s16_s11, 16, %s2135_s12, [#allocation2] }
   0x3   :  { %2133 = dma.done.wait [#allocation2], 16 }
   0x4   :  { %2134 = vsyncadd [#allocation2], 4294967280 }
   0x5   :  { %21 = sfence }
   0x6   :  { %v54_v0 = vld [vmem:[%s2684_s3] sm:$0xff]  ;;  %vm59_vm0 = vcmask 64512   ;;  %v48_v2 = vld [vmem:[%s2682_s1 + $0x50] sm:$0xff]  ;;  %v39_v3 = vld [vmem:[%s2682_s1 + $0x8] sm:$0xff]  ;;  %s1673_s22 = sld [smem:[#allocation3 + $0x1]] }
   0x7   :  { %v38_v1 = vld [vmem:[%s2682_s1] sm:$0xff]  ;;  %123 = vmatpush.msra.mxu0 %v54_v0  ;;  %2033 = vmatpush.msra.mxu3 %v54_v0  ;;  %v49_v4 = vld [vmem:[%s2682_s1 + $0x58] sm:$0xff]  ;;  %v40_v5 = vld [vmem:[%s2682_s1 + $0x10] sm:$0xff]  ;;  %s1757_s20 = sld [smem:[#allocation3 + $0x2]] }
   0x8   :  { %1591 = vmatmul.msk.f32.vlgmr.msra.gmra.mxu0 %vm59_vm0, %v38_v1  ;;  %1601 = vmatmul.msk.f32.vlgmr.msra.gmra.mxu3 %vm59_vm0, %v48_v2  ;;  %v50_v6 = vld [vmem:[%s2682_s1 + $0x60] sm:$0xff]  ;;  %v41_v7 = vld [vmem:[%s2682_s1 + $0x18] sm:$0xff]  ;;  %v51_v8 = vld [vmem:[%s2682_s1 + $0x68] sm:$0xff]  ;;  %s1841_s19 = sld [smem:[#allocation3 + $0x3]] }
   0x9   :  { %v42_v9 = vld [vmem:[%s2682_s1 + $0x20] sm:$0xff]  ;;  %v52_v10 = vld [vmem:[%s2682_s1 + $0x70] sm:$0xff]  ;;  %v43_v11 = vld [vmem:[%s2682_s1 + $0x28] sm:$0xff] }
   0xa   :  { %v53_v12 = vld [vmem:[%s2682_s1 + $0x78] sm:$0xff]  ;;  %v44_v13 = vld [vmem:[%s2682_s1 + $0x30] sm:$0xff]  ;;  %v46_v15 = vld [vmem:[%s2682_s1 + $0x40] sm:$0xff] }
   0xb   :  { %v45_v14 = vld [vmem:[%s2682_s1 + $0x38] sm:$0xff]  ;;  %v47_v16 = vld [vmem:[%s2682_s1 + $0x48] sm:$0xff]  ;;  %v2051_v28 = vld [vmem:[%s2685_s4] ss:$0 sm:$0xff]  ;;  %s181_s1 = sld [smem:[#allocation3]] }
   0xc   :  { %v1973_v63 = vld [vmem:[%s2686_s5 + $0x38] sm:$0xff]  ;;  %v1972_v0 = vld [vmem:[%s2686_s5 + $0x30] sm:$0xff]  ;;  %v1971_v1 = vld [vmem:[%s2686_s5 + $0x28] sm:$0xff]  ;;  %s1974_s23 = sshll.u32 %s1673_s22, 6 }
   0xd   :  { %v1970_v2 = vld [vmem:[%s2686_s5 + $0x20] sm:$0xff]  ;;  %s2292_s24 = scalar_lea.vmem %s2683_s2, %s1974_s23  ;;  %s1991_s21 = sshll.u32 %s1757_s20, 6 }
   0xe   :  { %s2008_s3 = sshll.u32 %s1841_s19, 6 }
   0xf   :  { %s2372_s22 = scalar_lea.vmem %s2683_s2, %s2008_s3 }
  0x10   :  { %1592 = vmatmul.msk.f32.gmra.mxu0 %vm59_vm0, %v39_v3  ;;  %1602 = vmatmul.msk.f32.gmra.mxu3 %vm59_vm0, %v49_v4 }
  0x11   :  { %s1957_s4 = sshll.u32 %s181_s1, 6  ;;  %s2332_s1 = scalar_lea.vmem %s2683_s2, %s1991_s21 }
  0x12   :  { %s184_s26 = scalar_lea.vmem %s2683_s2, %s1957_s4 }
  0x13   :  { %v1958_v58 = vld [vmem:[%s184_s26] sm:$0xff]  ;;  %v1960_v59 = vld [vmem:[%s184_s26 + $0x10] sm:$0xff]  ;;  %v1959_v60 = vld [vmem:[%s184_s26 + $0x8] sm:$0xff] }
  0x14   :  { %v1961_v61 = vld [vmem:[%s184_s26 + $0x18] sm:$0xff]  ;;  %v1964_v62 = vld [vmem:[%s184_s26 + $0x30] sm:$0xff]  ;;  %v1962_v3 = vld [vmem:[%s184_s26 + $0x20] sm:$0xff] }
  0x15   :  { %v1965_v4 = vld [vmem:[%s184_s26 + $0x38] sm:$0xff] }
  0x18   :  { %1593 = vmatmul.msk.f32.gmra.mxu0 %vm59_vm0, %v40_v5  ;;  %1603 = vmatmul.msk.f32.gmra.mxu3 %vm59_vm0, %v50_v6  ;;  %v1969_v5 = vld [vmem:[%s2686_s5 + $0x18] sm:$0xff]  ;;  %v1963_v6 = vld [vmem:[%s184_s26 + $0x28] sm:$0xff] }
  0x20   :  { %1594 = vmatmul.msk.f32.gmra.mxu0 %vm59_vm0, %v41_v7  ;;  %1604 = vmatmul.msk.f32.gmra.mxu3 %vm59_vm0, %v51_v8  ;;  %v1968_v7 = vld [vmem:[%s2686_s5 + $0x10] sm:$0xff]  ;;  %v1967_v8 = vld [vmem:[%s2686_s5 + $0x8] sm:$0xff] }
  0x28   :  { %1595 = vmatmul.msk.f32.gmra.mxu0 %vm59_vm0, %v42_v9  ;;  %1605 = vmatmul.msk.f32.gmra.mxu3 %vm59_vm0, %v52_v10  ;;  %v1966_v9 = vld [vmem:[%s2686_s5] sm:$0xff] }
  0x30   :  { %1596 = vmatmul.msk.f32.gmra.mxu0 %vm59_vm0, %v43_v11  ;;  %1606 = vmatmul.msk.f32.gmra.mxu3 %vm59_vm0, %v53_v12 }
  0x38   :  { %1597 = vmatmul.msk.f32.gmra.mxu0 %vm59_vm0, %v44_v13 }
  0x40   :  { %1598 = vmatmul.msk.f32.gmra.mxu0 %vm59_vm0, %v45_v14 }
  0x48   :  { %1599 = vmatmul.msk.f32.gmra.mxu0 %vm59_vm0, %v46_v15 }
  0x50   :  { %1600 = vmatmul.msk.f32.gmra.mxu0 %vm59_vm0, %v47_v16 }
  0x85   :  { %v125_v17 = vpop.f32.mrf.mxu0 }
  0x86   :  { %v126_v56 = vadd.f32 %v2051_v28, %v125_v17 }
  0x8b   :  { %v155_v18 = vpop.f32.mrf.mxu3 }
  0x8c   :  { %v156_v36 = vadd.f32 %v2051_v28, %v155_v18 }
  0x8d   :  { %v128_v19 = vpop.f32.mrf.mxu0 }
  0x8e   :  { %v129_v54 = vadd.f32 %v2051_v28, %v128_v19 }
  0x90   :  { %v173_v57 = vpack.c.bf16 %v129_v54, %v126_v56 }
  0x93   :  { %v158_v20 = vpop.f32.mrf.mxu3 }
  0x94   :  { %v159_v37 = vadd.f32 %v2051_v28, %v158_v20 }
  0x95   :  { %v131_v21 = vpop.f32.mrf.mxu0 }
  0x96   :  { %v178_v40 = vpack.c.bf16 %v159_v37, %v156_v36  ;;  %v132_v53 = vadd.f32 %v2051_v28, %v131_v21 }
  0x9b   :  { %v161_v22 = vpop.f32.mrf.mxu3 }
  0x9c   :  { %v162_v33 = vadd.f32 %v2051_v28, %v161_v22 }
  0x9d   :  { %v134_v23 = vpop.f32.mrf.mxu0 }
  0x9e   :  { %v135_v51 = vadd.f32 %v2051_v28, %v134_v23 }
  0xa0   :  { %v174_v55 = vpack.c.bf16 %v135_v51, %v132_v53 }
  0xa3   :  { %v164_v24 = vpop.f32.mrf.mxu3 }
  0xa4   :  { %v165_v34 = vadd.f32 %v2051_v28, %v164_v24 }
  0xa5   :  { %v137_v25 = vpop.f32.mrf.mxu0 }
  0xa6   :  { %v179_v38 = vpack.c.bf16 %v165_v34, %v162_v33  ;;  %v138_v50 = vadd.f32 %v2051_v28, %v137_v25 }
  0xab   :  { %v167_v26 = vpop.f32.mrf.mxu3 }
  0xac   :  { %v168_v29 = vadd.f32 %v2051_v28, %v167_v26 }
  0xad   :  { %v140_v27 = vpop.f32.mrf.mxu0 }
  0xae   :  { %v141_v48 = vadd.f32 %v2051_v28, %v140_v27 }
  0xb0   :  { %v175_v52 = vpack.c.bf16 %v141_v48, %v138_v50 }
  0xb3   :  { %v170_v30 = vpop.f32.mrf.mxu3 }
  0xb4   :  { %v171_v31 = vadd.f32 %v2051_v28, %v170_v30 }
  0xb5   :  { %v143_v32 = vpop.f32.mrf.mxu0 }
  0xb6   :  { %v180_v35 = vpack.c.bf16 %v171_v31, %v168_v29  ;;  %v144_v47 = vadd.f32 %v2051_v28, %v143_v32 }
  0xb8   :  { %249 = vmatpush.bf16.msra.mxu1 %v180_v35  ;;  %2034 = vmatpush.bf16.msra.mxu2 %v180_v35 }
  0xb9   :  { %2035 = vmatpush.bf16.msrb.mxu3 %v180_v35 }
  0xbc   :  { %250 = vmatpush.bf16.msra.mxu1 %v179_v38  ;;  %2036 = vmatpush.bf16.msra.mxu2 %v179_v38 }
  0xbd   :  { %2037 = vmatpush.bf16.msrb.mxu3 %v179_v38  ;;  %v146_v39 = vpop.f32.mrf.mxu0 }
  0xbe   :  { %v147_v45 = vadd.f32 %v2051_v28, %v146_v39 }
  0xc0   :  { %251 = vmatpush.bf16.msra.mxu1 %v178_v40  ;;  %2038 = vmatpush.bf16.msra.mxu2 %v178_v40  ;;  %v176_v49 = vpack.c.bf16 %v147_v45, %v144_v47 }
  0xc1   :  { %2039 = vmatpush.bf16.msrb.mxu3 %v178_v40 }
  0xc5   :  { %v149_v41 = vpop.f32.mrf.mxu0 }
  0xc6   :  { %v150_v43 = vadd.f32 %v2051_v28, %v149_v41 }
  0xcd   :  { %v152_v42 = vpop.f32.mrf.mxu0 }
  0xce   :  { %v153_v44 = vadd.f32 %v2051_v28, %v152_v42 }
  0xd0   :  { %v177_v46 = vpack.c.bf16 %v153_v44, %v150_v43 }
  0xd2   :  { %252 = vmatpush.bf16.msra.mxu1 %v177_v46  ;;  %2040 = vmatpush.bf16.msra.mxu2 %v177_v46 }
  0xd3   :  { %2041 = vmatpush.bf16.msrb.mxu3 %v177_v46 }
  0xd6   :  { %253 = vmatpush.bf16.msra.mxu1 %v176_v49  ;;  %2042 = vmatpush.bf16.msra.mxu2 %v176_v49 }
  0xd7   :  { %2043 = vmatpush.bf16.msrb.mxu3 %v176_v49  ;;  %v2052_v49 = vld [vmem:[%s2687_s6] ss:$0 sm:$0xff] }
  0xda   :  { %254 = vmatpush.bf16.msra.mxu1 %v175_v52  ;;  %2044 = vmatpush.bf16.msra.mxu2 %v175_v52 }
  0xdb   :  { %2045 = vmatpush.bf16.msrb.mxu3 %v175_v52 }
  0xde   :  { %255 = vmatpush.bf16.msra.mxu1 %v174_v55  ;;  %2046 = vmatpush.bf16.msra.mxu2 %v174_v55 }
  0xdf   :  { %2047 = vmatpush.bf16.msrb.mxu3 %v174_v55 }
  0xe2   :  { %256 = vmatpush.bf16.msra.mxu1 %v173_v57  ;;  %2048 = vmatpush.bf16.msra.mxu2 %v173_v57 }
  0xe3   :  { %2049 = vmatpush.bf16.msrb.mxu3 %v173_v57 }
  0xe5   :  { %257 = vmatmul.bf16.vlgmr.msra.gmra.mxu1 %v1958_v58  ;;  %267 = vmatmul.bf16.vlgmr.msra.gmra.mxu2 %v1960_v59 }
  0xe6   :  { %287 = vmatmul.bf16.vlgmr.msrb.gmra.mxu3 %v1964_v62  ;;  %374 = vmatpush.bf16.msrb.mxu2 %v1973_v63 }
  0xea   :  { %375 = vmatpush.bf16.msrb.mxu2 %v1972_v0 }
  0xee   :  { %376 = vmatpush.bf16.msrb.mxu2 %v1971_v1 }
  0xf2   :  { %377 = vmatpush.bf16.msrb.mxu2 %v1970_v2 }
  0xf5   :  { %262 = vmatmul.bf16.gmra.mxu1 %v1959_v60  ;;  %272 = vmatmul.bf16.gmra.mxu2 %v1961_v61 }
  0xf6   :  { %292 = vmatmul.bf16.gmra.mxu3 %v1965_v4  ;;  %378 = vmatpush.bf16.msrb.mxu2 %v1969_v5 }
  0xfa   :  { %379 = vmatpush.bf16.msrb.mxu2 %v1968_v7 }
  0xfe   :  { %380 = vmatpush.bf16.msrb.mxu2 %v1967_v8 }
 0x102   :  { %381 = vmatpush.bf16.msrb.mxu2 %v1966_v9 }
 0x105   :  { %277 = vmatmul.bf16.gmra.mxu2 %v1962_v3 }
 0x115   :  { %282 = vmatmul.bf16.gmra.mxu2 %v1963_v6 }
 0x162   :  { %v258_v10 = vpop.f32.mrf.mxu1 }
 0x168   :  { %v268_v14 = vpop.f32.mrf.mxu2 }
 0x169   :  { %v288_v27 = vpop.f32.mrf.mxu3 }
 0x16a   :  { %v260_v11 = vpop.f32.mrf.mxu1 }
 0x16b   :  { %v298_v12 = vpack.c.bf16 %v260_v11, %v258_v10 }
 0x16d   :  { %382 = vmatmul.bf16.vlgmr.msrb.gmra.mxu2 %v298_v12 }
 0x170   :  { %v270_v17 = vpop.f32.mrf.mxu2 }
 0x171   :  { %v300_v19 = vpack.c.bf16 %v270_v17, %v268_v14  ;;  %v290_v29 = vpop.f32.mrf.mxu3 }
 0x172   :  { %v263_v13 = vpop.f32.mrf.mxu1  ;;  %v304_v30 = vpack.c.bf16 %v290_v29, %v288_v27  ;;  %v1975_v27 = vld [vmem:[%s2292_s24] sm:$0xff]  ;;  %v1977_v29 = vld [vmem:[%s2292_s24 + $0x10] sm:$0xff] }
 0x178   :  { %v273_v18 = vpop.f32.mrf.mxu2 }
 0x179   :  { %v293_v31 = vpop.f32.mrf.mxu3 }
 0x17a   :  { %v265_v15 = vpop.f32.mrf.mxu1 }
 0x17b   :  { %v299_v16 = vpack.c.bf16 %v265_v15, %v263_v13 }
 0x17d   :  { %387 = vmatmul.bf16.gmra.mxu2 %v299_v16 }
 0x180   :  { %v275_v20 = vpop.f32.mrf.mxu2 }
 0x181   :  { %v301_v22 = vpack.c.bf16 %v275_v20, %v273_v18  ;;  %v295_v32 = vpop.f32.mrf.mxu3 }
 0x182   :  { %v305_v33 = vpack.c.bf16 %v295_v32, %v293_v31  ;;  %v1979_v31 = vld [vmem:[%s2292_s24 + $0x20] sm:$0xff]  ;;  %v1990_v32 = vld [vmem:[%s2686_s5 + $0x78] sm:$0xff] }
 0x183   :  { %642 = vmatpush.bf16.msrb.mxu0 %v1990_v32 }
 0x188   :  { %v278_v21 = vpop.f32.mrf.mxu2 }
 0x18d   :  { %392 = vmatmul.bf16.gmra.mxu2 %v300_v19 }
 0x190   :  { %v280_v23 = vpop.f32.mrf.mxu2 }
 0x191   :  { %v302_v24 = vpack.c.bf16 %v280_v23, %v278_v21 }
 0x198   :  { %v283_v25 = vpop.f32.mrf.mxu2 }
 0x19d   :  { %397 = vmatmul.bf16.gmra.mxu2 %v301_v22 }
 0x1a0   :  { %v285_v26 = vpop.f32.mrf.mxu2 }
 0x1a1   :  { %v303_v28 = vpack.c.bf16 %v285_v26, %v283_v25 }
 0x1ad   :  { %402 = vmatmul.bf16.gmra.mxu2 %v302_v24 }
 0x1bd   :  { %407 = vmatmul.bf16.gmra.mxu2 %v303_v28  ;;  %v1976_v28 = vld [vmem:[%s2292_s24 + $0x8] sm:$0xff] }
 0x1cd   :  { %412 = vmatmul.bf16.gmra.mxu2 %v304_v30  ;;  %v1978_v30 = vld [vmem:[%s2292_s24 + $0x18] sm:$0xff] }
 0x1dd   :  { %417 = vmatmul.bf16.gmra.mxu2 %v305_v33  ;;  %v1980_v33 = vld [vmem:[%s2292_s24 + $0x28] sm:$0xff] }
 0x1f0   :  { %v383_v34 = vpop.f32.mrf.mxu2 }
 0x1f1   :  { %v384_v21 = vadd.f32 %v2052_v49, %v383_v34  ;;  %v1989_v34 = vld [vmem:[%s2686_s5 + $0x70] sm:$0xff] }
 0x1f2   :  { %643 = vmatpush.bf16.msrb.mxu0 %v1989_v34 }
 0x1f3   :  { %v423_v25 = vmax.f32 %v384_v21, 0.0 }
 0x1f8   :  { %v385_v35 = vpop.f32.mrf.mxu2 }
 0x1f9   :  { %v386_v18 = vadd.f32 %v2052_v49, %v385_v35  ;;  %v1988_v35 = vld [vmem:[%s2686_s5 + $0x68] sm:$0xff] }
 0x1fa   :  { %644 = vmatpush.bf16.msrb.mxu0 %v1988_v35 }
 0x1fb   :  { %v424_v23 = vmax.f32 %v386_v18, 0.0  ;;  %v2053_v18 = vld [vmem:[%s2687_s6 + $0x1] ss:$0 sm:$0xff] }
 0x1fd   :  { %v439_v26 = vpack.c.bf16 %v424_v23, %v423_v25 }
 0x200   :  { %v388_v36 = vpop.f32.mrf.mxu2 }
 0x201   :  { %v389_v16 = vadd.f32 %v2052_v49, %v388_v36  ;;  %v1987_v36 = vld [vmem:[%s2686_s5 + $0x60] sm:$0xff] }
 0x202   :  { %645 = vmatpush.bf16.msrb.mxu0 %v1987_v36 }
 0x203   :  { %v425_v22 = vmax.f32 %v389_v16, 0.0 }
 0x208   :  { %v390_v37 = vpop.f32.mrf.mxu2 }
 0x209   :  { %v391_v13 = vadd.f32 %v2052_v49, %v390_v37  ;;  %v1986_v37 = vld [vmem:[%s2686_s5 + $0x58] sm:$0xff] }
 0x20a   :  { %646 = vmatpush.bf16.msrb.mxu0 %v1986_v37 }
 0x20b   :  { %v426_v19 = vmax.f32 %v391_v13, 0.0 }
 0x20d   :  { %v440_v24 = vpack.c.bf16 %v426_v19, %v425_v22 }
 0x210   :  { %v393_v38 = vpop.f32.mrf.mxu2 }
 0x211   :  { %v394_v11 = vadd.f32 %v2052_v49, %v393_v38  ;;  %v1981_v38 = vld [vmem:[%s2292_s24 + $0x30] sm:$0xff] }
 0x213   :  { %v427_v17 = vmax.f32 %v394_v11, 0.0 }
 0x218   :  { %v395_v39 = vpop.f32.mrf.mxu2 }
 0x219   :  { %v396_v8 = vadd.f32 %v2052_v49, %v395_v39  ;;  %v1985_v39 = vld [vmem:[%s2686_s5 + $0x50] sm:$0xff] }
 0x21a   :  { %647 = vmatpush.bf16.msrb.mxu0 %v1985_v39 }
 0x21b   :  { %v428_v14 = vmax.f32 %v396_v8, 0.0 }
 0x21d   :  { %v441_v20 = vpack.c.bf16 %v428_v14, %v427_v17 }
 0x220   :  { %v398_v40 = vpop.f32.mrf.mxu2 }
 0x221   :  { %v399_v6 = vadd.f32 %v2052_v49, %v398_v40  ;;  %v1984_v40 = vld [vmem:[%s2686_s5 + $0x48] sm:$0xff] }
 0x222   :  { %648 = vmatpush.bf16.msrb.mxu0 %v1984_v40 }
 0x223   :  { %v429_v12 = vmax.f32 %v399_v6, 0.0 }
 0x228   :  { %v400_v41 = vpop.f32.mrf.mxu2 }
 0x229   :  { %v401_v3 = vadd.f32 %v2052_v49, %v400_v41  ;;  %v1983_v41 = vld [vmem:[%s2686_s5 + $0x40] sm:$0xff] }
 0x22a   :  { %649 = vmatpush.bf16.msrb.mxu0 %v1983_v41 }
 0x22b   :  { %v430_v9 = vmax.f32 %v401_v3, 0.0 }
 0x22d   :  { %v442_v15 = vpack.c.bf16 %v430_v9, %v429_v12 }
 0x230   :  { %v403_v42 = vpop.f32.mrf.mxu2 }
 0x231   :  { %v404_v1 = vadd.f32 %v2052_v49, %v403_v42  ;;  %v1982_v42 = vld [vmem:[%s2292_s24 + $0x38] sm:$0xff] }
 0x233   :  { %v431_v7 = vmax.f32 %v404_v1, 0.0 }
 0x238   :  { %v405_v43 = vpop.f32.mrf.mxu2 }
 0x239   :  { %v406_v62 = vadd.f32 %v2052_v49, %v405_v43 }
 0x23b   :  { %v432_v4 = vmax.f32 %v406_v62, 0.0 }
 0x23d   :  { %v443_v10 = vpack.c.bf16 %v432_v4, %v431_v7 }
 0x240   :  { %v408_v44 = vpop.f32.mrf.mxu2 }
 0x241   :  { %v409_v60 = vadd.f32 %v2052_v49, %v408_v44 }
 0x243   :  { %v433_v2 = vmax.f32 %v409_v60, 0.0 }
 0x248   :  { %v410_v45 = vpop.f32.mrf.mxu2 }
 0x249   :  { %v411_v57 = vadd.f32 %v2052_v49, %v410_v45 }
 0x24b   :  { %v434_v63 = vmax.f32 %v411_v57, 0.0 }
 0x24d   :  { %v444_v5 = vpack.c.bf16 %v434_v63, %v433_v2 }
 0x250   :  { %v413_v46 = vpop.f32.mrf.mxu2 }
 0x251   :  { %v414_v54 = vadd.f32 %v2052_v49, %v413_v46 }
 0x253   :  { %v435_v61 = vmax.f32 %v414_v54, 0.0 }
 0x258   :  { %v415_v47 = vpop.f32.mrf.mxu2 }
 0x259   :  { %v416_v52 = vadd.f32 %v2052_v49, %v415_v47 }
 0x25b   :  { %v436_v58 = vmax.f32 %v416_v52, 0.0 }
 0x25d   :  { %v445_v0 = vpack.c.bf16 %v436_v58, %v435_v61 }
 0x260   :  { %v418_v48 = vpop.f32.mrf.mxu2 }
 0x261   :  { %v419_v50 = vadd.f32 %v2052_v49, %v418_v48 }
 0x263   :  { %v437_v55 = vmax.f32 %v419_v50, 0.0 }
 0x268   :  { %v420_v51 = vpop.f32.mrf.mxu2 }
 0x269   :  { %v421_v53 = vadd.f32 %v2052_v49, %v420_v51 }
 0x26b   :  { %v438_v56 = vmax.f32 %v421_v53, 0.0 }
 0x26d   :  { %v446_v59 = vpack.c.bf16 %v438_v56, %v437_v55 }
 0x26f   :  { %515 = vmatpush.bf16.msra.mxu3 %v446_v59 }
 0x273   :  { %516 = vmatpush.bf16.msra.mxu3 %v445_v0 }
 0x277   :  { %517 = vmatpush.bf16.msra.mxu3 %v444_v5 }
 0x27b   :  { %518 = vmatpush.bf16.msra.mxu3 %v443_v10 }
 0x27f   :  { %519 = vmatpush.bf16.msra.mxu3 %v442_v15 }
 0x283   :  { %520 = vmatpush.bf16.msra.mxu3 %v441_v20 }
 0x287   :  { %521 = vmatpush.bf16.msra.mxu3 %v440_v24 }
 0x28b   :  { %522 = vmatpush.bf16.msra.mxu3 %v439_v26 }
 0x28e   :  { %523 = vmatmul.bf16.vlgmr.msra.gmra.mxu3 %v1975_v27 }
 0x29e   :  { %528 = vmatmul.bf16.gmra.mxu3 %v1976_v28 }
 0x2ae   :  { %533 = vmatmul.bf16.gmra.mxu3 %v1977_v29 }
 0x2be   :  { %538 = vmatmul.bf16.gmra.mxu3 %v1978_v30 }
 0x2ce   :  { %543 = vmatmul.bf16.gmra.mxu3 %v1979_v31 }
 0x2de   :  { %548 = vmatmul.bf16.gmra.mxu3 %v1980_v33 }
 0x2ee   :  { %553 = vmatmul.bf16.gmra.mxu3 %v1981_v38 }
 0x2fe   :  { %558 = vmatmul.bf16.gmra.mxu3 %v1982_v42 }
 0x311   :  { %v524_v43 = vpop.f32.mrf.mxu3 }
 0x319   :  { %v526_v44 = vpop.f32.mrf.mxu3 }
 0x31a   :  { %v564_v45 = vpack.c.bf16 %v526_v44, %v524_v43 }
 0x31c   :  { %650 = vmatmul.bf16.vlgmr.msrb.gmra.mxu0 %v564_v45 }
 0x321   :  { %v529_v46 = vpop.f32.mrf.mxu3 }
 0x329   :  { %v531_v47 = vpop.f32.mrf.mxu3 }
 0x32a   :  { %v565_v48 = vpack.c.bf16 %v531_v47, %v529_v46 }
 0x32c   :  { %655 = vmatmul.bf16.gmra.mxu0 %v565_v48 }
 0x331   :  { %v534_v49 = vpop.f32.mrf.mxu3 }
 0x339   :  { %v536_v50 = vpop.f32.mrf.mxu3 }
 0x33a   :  { %v566_v51 = vpack.c.bf16 %v536_v50, %v534_v49 }
 0x33c   :  { %660 = vmatmul.bf16.gmra.mxu0 %v566_v51 }
 0x341   :  { %v539_v52 = vpop.f32.mrf.mxu3 }
 0x349   :  { %v541_v53 = vpop.f32.mrf.mxu3 }
 0x34a   :  { %v567_v54 = vpack.c.bf16 %v541_v53, %v539_v52 }
 0x34c   :  { %665 = vmatmul.bf16.gmra.mxu0 %v567_v54 }
 0x351   :  { %v544_v55 = vpop.f32.mrf.mxu3 }
 0x359   :  { %v546_v56 = vpop.f32.mrf.mxu3 }
 0x35a   :  { %v568_v57 = vpack.c.bf16 %v546_v56, %v544_v55 }
 0x35c   :  { %670 = vmatmul.bf16.gmra.mxu0 %v568_v57 }
 0x361   :  { %v549_v58 = vpop.f32.mrf.mxu3 }
 0x369   :  { %v551_v59 = vpop.f32.mrf.mxu3 }
 0x36a   :  { %v569_v60 = vpack.c.bf16 %v551_v59, %v549_v58 }
 0x36c   :  { %675 = vmatmul.bf16.gmra.mxu0 %v569_v60  ;;  %v1992_v60 = vld [vmem:[%s2332_s1] sm:$0xff] }
 0x371   :  { %v554_v61 = vpop.f32.mrf.mxu3 }
 0x379   :  { %v556_v62 = vpop.f32.mrf.mxu3 }
 0x37a   :  { %v570_v63 = vpack.c.bf16 %v556_v62, %v554_v61  ;;  %v1993_v61 = vld [vmem:[%s2332_s1 + $0x8] sm:$0xff]  ;;  %v1994_v62 = vld [vmem:[%s2332_s1 + $0x10] sm:$0xff] }
 0x37c   :  { %680 = vmatmul.bf16.gmra.mxu0 %v570_v63  ;;  %v1995_v63 = vld [vmem:[%s2332_s1 + $0x18] sm:$0xff] }
 0x381   :  { %v559_v0 = vpop.f32.mrf.mxu3 }
 0x389   :  { %v561_v1 = vpop.f32.mrf.mxu3 }
 0x38a   :  { %v571_v2 = vpack.c.bf16 %v561_v1, %v559_v0  ;;  %v1996_v0 = vld [vmem:[%s2332_s1 + $0x20] sm:$0xff]  ;;  %v2007_v1 = vld [vmem:[%s2686_s5 + $0xb8] sm:$0xff] }
 0x38b   :  { %910 = vmatpush.bf16.msra.mxu2 %v2007_v1 }
 0x38c   :  { %685 = vmatmul.bf16.gmra.mxu0 %v571_v2  ;;  %v2006_v2 = vld [vmem:[%s2686_s5 + $0xb0] sm:$0xff] }
 0x38f   :  { %911 = vmatpush.bf16.msra.mxu2 %v2006_v2 }
 0x399   :  { %v651_v3 = vpop.f32.mrf.mxu0 }
 0x39a   :  { %v652_v54 = vadd.f32 %v2053_v18, %v651_v3  ;;  %v1997_v3 = vld [vmem:[%s2332_s1 + $0x28] sm:$0xff] }
 0x39c   :  { %v691_v58 = vmax.f32 %v652_v54, 0.0 }
 0x3a1   :  { %v653_v4 = vpop.f32.mrf.mxu0 }
 0x3a2   :  { %v654_v51 = vadd.f32 %v2053_v18, %v653_v4  ;;  %v2005_v4 = vld [vmem:[%s2686_s5 + $0xa8] sm:$0xff] }
 0x3a3   :  { %912 = vmatpush.bf16.msra.mxu2 %v2005_v4 }
 0x3a4   :  { %v692_v56 = vmax.f32 %v654_v51, 0.0 }
 0x3a6   :  { %v707_v59 = vpack.c.bf16 %v692_v56, %v691_v58 }
 0x3a9   :  { %v656_v5 = vpop.f32.mrf.mxu0 }
 0x3aa   :  { %v657_v49 = vadd.f32 %v2053_v18, %v656_v5  ;;  %v2004_v5 = vld [vmem:[%s2686_s5 + $0xa0] sm:$0xff] }
 0x3ab   :  { %913 = vmatpush.bf16.msra.mxu2 %v2004_v5 }
 0x3ac   :  { %v693_v55 = vmax.f32 %v657_v49, 0.0 }
 0x3b1   :  { %v658_v6 = vpop.f32.mrf.mxu0 }
 0x3b2   :  { %v659_v46 = vadd.f32 %v2053_v18, %v658_v6  ;;  %v2003_v6 = vld [vmem:[%s2686_s5 + $0x98] sm:$0xff] }
 0x3b3   :  { %914 = vmatpush.bf16.msra.mxu2 %v2003_v6 }
 0x3b4   :  { %v694_v52 = vmax.f32 %v659_v46, 0.0 }
 0x3b6   :  { %v708_v57 = vpack.c.bf16 %v694_v52, %v693_v55 }
 0x3b9   :  { %v661_v7 = vpop.f32.mrf.mxu0 }
 0x3ba   :  { %v662_v44 = vadd.f32 %v2053_v18, %v661_v7  ;;  %v1998_v7 = vld [vmem:[%s2332_s1 + $0x30] sm:$0xff] }
 0x3bc   :  { %v695_v50 = vmax.f32 %v662_v44, 0.0 }
 0x3c1   :  { %v663_v8 = vpop.f32.mrf.mxu0 }
 0x3c2   :  { %v664_v41 = vadd.f32 %v2053_v18, %v663_v8  ;;  %v2002_v8 = vld [vmem:[%s2686_s5 + $0x90] sm:$0xff] }
 0x3c3   :  { %915 = vmatpush.bf16.msra.mxu2 %v2002_v8 }
 0x3c4   :  { %v696_v47 = vmax.f32 %v664_v41, 0.0 }
 0x3c6   :  { %v709_v53 = vpack.c.bf16 %v696_v47, %v695_v50 }
 0x3c9   :  { %v666_v9 = vpop.f32.mrf.mxu0 }
 0x3ca   :  { %v667_v39 = vadd.f32 %v2053_v18, %v666_v9  ;;  %v2001_v9 = vld [vmem:[%s2686_s5 + $0x88] sm:$0xff] }
 0x3cb   :  { %916 = vmatpush.bf16.msra.mxu2 %v2001_v9 }
 0x3cc   :  { %v697_v45 = vmax.f32 %v667_v39, 0.0 }
 0x3d1   :  { %v668_v10 = vpop.f32.mrf.mxu0 }
 0x3d2   :  { %v669_v36 = vadd.f32 %v2053_v18, %v668_v10  ;;  %v2000_v10 = vld [vmem:[%s2686_s5 + $0x80] sm:$0xff] }
 0x3d3   :  { %917 = vmatpush.bf16.msra.mxu2 %v2000_v10 }
 0x3d4   :  { %v698_v42 = vmax.f32 %v669_v36, 0.0 }
 0x3d6   :  { %v710_v48 = vpack.c.bf16 %v698_v42, %v697_v45 }
 0x3d9   :  { %v671_v11 = vpop.f32.mrf.mxu0 }
 0x3da   :  { %v672_v34 = vadd.f32 %v2053_v18, %v671_v11  ;;  %v1999_v11 = vld [vmem:[%s2332_s1 + $0x38] sm:$0xff] }
 0x3dc   :  { %v699_v40 = vmax.f32 %v672_v34, 0.0 }
 0x3e1   :  { %v673_v12 = vpop.f32.mrf.mxu0 }
 0x3e2   :  { %v674_v31 = vadd.f32 %v2053_v18, %v673_v12 }
 0x3e4   :  { %v700_v37 = vmax.f32 %v674_v31, 0.0 }
 0x3e6   :  { %v711_v43 = vpack.c.bf16 %v700_v37, %v699_v40  ;;  %v2054_v37 = vld [vmem:[%s2687_s6 + $0x2] ss:$0 sm:$0xff] }
 0x3e9   :  { %v676_v13 = vpop.f32.mrf.mxu0 }
 0x3ea   :  { %v677_v29 = vadd.f32 %v2053_v18, %v676_v13 }
 0x3ec   :  { %v701_v35 = vmax.f32 %v677_v29, 0.0 }
 0x3f1   :  { %v678_v14 = vpop.f32.mrf.mxu0 }
 0x3f2   :  { %v679_v26 = vadd.f32 %v2053_v18, %v678_v14 }
 0x3f4   :  { %v702_v32 = vmax.f32 %v679_v26, 0.0 }
 0x3f6   :  { %v712_v38 = vpack.c.bf16 %v702_v32, %v701_v35 }
 0x3f9   :  { %v681_v15 = vpop.f32.mrf.mxu0 }
 0x3fa   :  { %v682_v23 = vadd.f32 %v2053_v18, %v681_v15 }
 0x3fc   :  { %v703_v30 = vmax.f32 %v682_v23, 0.0 }
 0x401   :  { %v683_v16 = vpop.f32.mrf.mxu0 }
 0x402   :  { %v684_v21 = vadd.f32 %v2053_v18, %v683_v16 }
 0x404   :  { %v704_v27 = vmax.f32 %v684_v21, 0.0 }
 0x406   :  { %v713_v33 = vpack.c.bf16 %v704_v27, %v703_v30 }
 0x409   :  { %v686_v17 = vpop.f32.mrf.mxu0 }
 0x40a   :  { %v687_v19 = vadd.f32 %v2053_v18, %v686_v17 }
 0x40c   :  { %v705_v24 = vmax.f32 %v687_v19, 0.0 }
 0x411   :  { %v688_v20 = vpop.f32.mrf.mxu0 }
 0x412   :  { %v689_v22 = vadd.f32 %v2053_v18, %v688_v20 }
 0x414   :  { %v706_v25 = vmax.f32 %v689_v22, 0.0 }
 0x416   :  { %v714_v28 = vpack.c.bf16 %v706_v25, %v705_v24 }
 0x418   :  { %783 = vmatpush.bf16.msrb.mxu1 %v714_v28 }
 0x41c   :  { %784 = vmatpush.bf16.msrb.mxu1 %v713_v33 }
 0x420   :  { %785 = vmatpush.bf16.msrb.mxu1 %v712_v38 }
 0x424   :  { %786 = vmatpush.bf16.msrb.mxu1 %v711_v43 }
 0x428   :  { %787 = vmatpush.bf16.msrb.mxu1 %v710_v48 }
 0x42c   :  { %788 = vmatpush.bf16.msrb.mxu1 %v709_v53 }
 0x430   :  { %789 = vmatpush.bf16.msrb.mxu1 %v708_v57 }
 0x434   :  { %790 = vmatpush.bf16.msrb.mxu1 %v707_v59 }
 0x437   :  { %791 = vmatmul.bf16.vlgmr.msrb.gmra.mxu1 %v1992_v60 }
 0x447   :  { %796 = vmatmul.bf16.gmra.mxu1 %v1993_v61 }
 0x457   :  { %801 = vmatmul.bf16.gmra.mxu1 %v1994_v62 }
 0x467   :  { %806 = vmatmul.bf16.gmra.mxu1 %v1995_v63 }
 0x477   :  { %811 = vmatmul.bf16.gmra.mxu1 %v1996_v0 }
 0x487   :  { %816 = vmatmul.bf16.gmra.mxu1 %v1997_v3 }
 0x497   :  { %821 = vmatmul.bf16.gmra.mxu1 %v1998_v7 }
 0x4a7   :  { %826 = vmatmul.bf16.gmra.mxu1 %v1999_v11 }
 0x4b4   :  { %v792_v12 = vpop.f32.mrf.mxu1 }
 0x4bc   :  { %v794_v13 = vpop.f32.mrf.mxu1 }
 0x4bd   :  { %v832_v14 = vpack.c.bf16 %v794_v13, %v792_v12 }
 0x4bf   :  { %918 = vmatmul.bf16.vlgmr.msra.gmra.mxu2 %v832_v14 }
 0x4c4   :  { %v797_v15 = vpop.f32.mrf.mxu1 }
 0x4cc   :  { %v799_v16 = vpop.f32.mrf.mxu1 }
 0x4cd   :  { %v833_v17 = vpack.c.bf16 %v799_v16, %v797_v15 }
 0x4cf   :  { %923 = vmatmul.bf16.gmra.mxu2 %v833_v17 }
 0x4d4   :  { %v802_v18 = vpop.f32.mrf.mxu1 }
 0x4dc   :  { %v804_v19 = vpop.f32.mrf.mxu1 }
 0x4dd   :  { %v834_v20 = vpack.c.bf16 %v804_v19, %v802_v18 }
 0x4df   :  { %928 = vmatmul.bf16.gmra.mxu2 %v834_v20 }
 0x4e4   :  { %v807_v21 = vpop.f32.mrf.mxu1 }
 0x4ec   :  { %v809_v22 = vpop.f32.mrf.mxu1 }
 0x4ed   :  { %v835_v23 = vpack.c.bf16 %v809_v22, %v807_v21 }
 0x4ef   :  { %933 = vmatmul.bf16.gmra.mxu2 %v835_v23 }
 0x4f4   :  { %v812_v24 = vpop.f32.mrf.mxu1 }
 0x4fc   :  { %v814_v25 = vpop.f32.mrf.mxu1 }
 0x4fd   :  { %v836_v26 = vpack.c.bf16 %v814_v25, %v812_v24 }
 0x4ff   :  { %938 = vmatmul.bf16.gmra.mxu2 %v836_v26 }
 0x504   :  { %v817_v27 = vpop.f32.mrf.mxu1 }
 0x50c   :  { %v819_v28 = vpop.f32.mrf.mxu1 }
 0x50d   :  { %v837_v29 = vpack.c.bf16 %v819_v28, %v817_v27 }
 0x50f   :  { %943 = vmatmul.bf16.gmra.mxu2 %v837_v29  ;;  %v2009_v29 = vld [vmem:[%s2372_s22] sm:$0xff] }
 0x514   :  { %v822_v30 = vpop.f32.mrf.mxu1 }
 0x51c   :  { %v824_v31 = vpop.f32.mrf.mxu1 }
 0x51d   :  { %v838_v32 = vpack.c.bf16 %v824_v31, %v822_v30  ;;  %v2010_v30 = vld [vmem:[%s2372_s22 + $0x8] sm:$0xff]  ;;  %v2011_v31 = vld [vmem:[%s2372_s22 + $0x10] sm:$0xff] }
 0x51f   :  { %948 = vmatmul.bf16.gmra.mxu2 %v838_v32  ;;  %v2012_v32 = vld [vmem:[%s2372_s22 + $0x18] sm:$0xff] }
 0x524   :  { %v827_v33 = vpop.f32.mrf.mxu1 }
 0x52c   :  { %v829_v34 = vpop.f32.mrf.mxu1 }
 0x52d   :  { %v839_v35 = vpack.c.bf16 %v829_v34, %v827_v33  ;;  %v2013_v33 = vld [vmem:[%s2372_s22 + $0x20] sm:$0xff]  ;;  %v2024_v34 = vld [vmem:[%s2686_s5 + $0xf8] sm:$0xff] }
 0x52e   :  { %1178 = vmatpush.bf16.msra.mxu0 %v2024_v34 }
 0x52f   :  { %953 = vmatmul.bf16.gmra.mxu2 %v839_v35  ;;  %v2014_v35 = vld [vmem:[%s2372_s22 + $0x28] sm:$0xff] }
 0x542   :  { %v919_v36 = vpop.f32.mrf.mxu2 }
 0x543   :  { %v920_v38 = vadd.f32 %v2054_v37, %v919_v36  ;;  %v2023_v36 = vld [vmem:[%s2686_s5 + $0xf0] sm:$0xff] }
 0x544   :  { %1179 = vmatpush.bf16.msra.mxu0 %v2023_v36 }
 0x545   :  { %v959_v41 = vmax.f32 %v920_v38, 0.0  ;;  %v2021_v38 = vld [vmem:[%s2686_s5 + $0xe0] sm:$0xff] }
 0x54a   :  { %v921_v39 = vpop.f32.mrf.mxu2 }
 0x54b   :  { %v922_v40 = vadd.f32 %v2054_v37, %v921_v39  ;;  %v2020_v39 = vld [vmem:[%s2686_s5 + $0xd8] sm:$0xff] }
 0x54d   :  { %v960_v42 = vmax.f32 %v922_v40, 0.0  ;;  %v2015_v40 = vld [vmem:[%s2372_s22 + $0x30] sm:$0xff] }
 0x54f   :  { %v975_v43 = vpack.c.bf16 %v960_v42, %v959_v41  ;;  %v2019_v41 = vld [vmem:[%s2686_s5 + $0xd0] sm:$0xff]  ;;  %v2018_v42 = vld [vmem:[%s2686_s5 + $0xc8] sm:$0xff] }
 0x552   :  { %v924_v44 = vpop.f32.mrf.mxu2 }
 0x553   :  { %v925_v45 = vadd.f32 %v2054_v37, %v924_v44  ;;  %v2016_v44 = vld [vmem:[%s2372_s22 + $0x38] sm:$0xff] }
 0x555   :  { %v961_v48 = vmax.f32 %v925_v45, 0.0 }
 0x55a   :  { %v926_v46 = vpop.f32.mrf.mxu2 }
 0x55b   :  { %v927_v47 = vadd.f32 %v2054_v37, %v926_v46 }
 0x55d   :  { %v962_v49 = vmax.f32 %v927_v47, 0.0 }
 0x55f   :  { %v976_v50 = vpack.c.bf16 %v962_v49, %v961_v48 }
 0x562   :  { %v929_v51 = vpop.f32.mrf.mxu2 }
 0x563   :  { %v930_v52 = vadd.f32 %v2054_v37, %v929_v51 }
 0x565   :  { %v963_v55 = vmax.f32 %v930_v52, 0.0 }
 0x56a   :  { %v931_v53 = vpop.f32.mrf.mxu2 }
 0x56b   :  { %v932_v54 = vadd.f32 %v2054_v37, %v931_v53 }
 0x56d   :  { %v964_v56 = vmax.f32 %v932_v54, 0.0 }
 0x56f   :  { %v977_v57 = vpack.c.bf16 %v964_v56, %v963_v55 }
 0x572   :  { %v934_v58 = vpop.f32.mrf.mxu2 }
 0x573   :  { %v935_v59 = vadd.f32 %v2054_v37, %v934_v58 }
 0x575   :  { %v965_v62 = vmax.f32 %v935_v59, 0.0 }
 0x57a   :  { %v936_v60 = vpop.f32.mrf.mxu2 }
 0x57b   :  { %v937_v61 = vadd.f32 %v2054_v37, %v936_v60 }
 0x57d   :  { %v966_v63 = vmax.f32 %v937_v61, 0.0  ;;  %v2032_v61 = vld [vmem:[%s2688_s7 + $0x38] sm:$0xff] }
 0x57e   :  { %1319 = vmatpush.bf16.msra.mxu1 %v2032_v61 }
 0x57f   :  { %v978_v0 = vpack.c.bf16 %v966_v63, %v965_v62 }
 0x582   :  { %v939_v1 = vpop.f32.mrf.mxu2 }
 0x583   :  { %v940_v23 = vadd.f32 %v2054_v37, %v939_v1  ;;  %v2030_v1 = vld [vmem:[%s2688_s7 + $0x28] sm:$0xff] }
 0x585   :  { %v967_v27 = vmax.f32 %v940_v23, 0.0 }
 0x58a   :  { %v941_v2 = vpop.f32.mrf.mxu2 }
 0x58b   :  { %v942_v20 = vadd.f32 %v2054_v37, %v941_v2 }
 0x58d   :  { %v968_v25 = vmax.f32 %v942_v20, 0.0 }
 0x58f   :  { %v979_v28 = vpack.c.bf16 %v968_v25, %v967_v27 }
 0x592   :  { %v944_v3 = vpop.f32.mrf.mxu2 }
 0x593   :  { %v945_v18 = vadd.f32 %v2054_v37, %v944_v3  ;;  %v2029_v3 = vld [vmem:[%s2688_s7 + $0x20] sm:$0xff] }
 0x595   :  { %v969_v24 = vmax.f32 %v945_v18, 0.0 }
 0x59a   :  { %v946_v4 = vpop.f32.mrf.mxu2 }
 0x59b   :  { %v947_v15 = vadd.f32 %v2054_v37, %v946_v4  ;;  %v2028_v4 = vld [vmem:[%s2688_s7 + $0x18] sm:$0xff] }
 0x59d   :  { %v970_v21 = vmax.f32 %v947_v15, 0.0 }
 0x59f   :  { %v980_v26 = vpack.c.bf16 %v970_v21, %v969_v24 }
 0x5a2   :  { %v949_v5 = vpop.f32.mrf.mxu2 }
 0x5a3   :  { %v950_v12 = vadd.f32 %v2054_v37, %v949_v5 }
 0x5a5   :  { %v971_v19 = vmax.f32 %v950_v12, 0.0 }
 0x5aa   :  { %v951_v6 = vpop.f32.mrf.mxu2 }
 0x5ab   :  { %v952_v10 = vadd.f32 %v2054_v37, %v951_v6 }
 0x5ad   :  { %v972_v16 = vmax.f32 %v952_v10, 0.0  ;;  %v2025_v10 = vld [vmem:[%s2688_s7] sm:$0xff] }
 0x5af   :  { %v981_v22 = vpack.c.bf16 %v972_v16, %v971_v19 }
 0x5b2   :  { %v954_v7 = vpop.f32.mrf.mxu2 }
 0x5b3   :  { %v955_v8 = vadd.f32 %v2054_v37, %v954_v7  ;;  %v2027_v7 = vld [vmem:[%s2688_s7 + $0x10] sm:$0xff] }
 0x5b5   :  { %v973_v13 = vmax.f32 %v955_v8, 0.0  ;;  %v2026_v8 = vld [vmem:[%s2688_s7 + $0x8] sm:$0xff] }
 0x5ba   :  { %v956_v9 = vpop.f32.mrf.mxu2 }
 0x5bb   :  { %v957_v11 = vadd.f32 %v2054_v37, %v956_v9  ;;  %v2022_v37 = vld [vmem:[%s2686_s5 + $0xe8] sm:$0xff] }
 0x5bc   :  { %1180 = vmatpush.bf16.msra.mxu0 %v2022_v37 }
 0x5bd   :  { %v974_v14 = vmax.f32 %v957_v11, 0.0 }
 0x5bf   :  { %v982_v17 = vpack.c.bf16 %v974_v14, %v973_v13  ;;  %v2055_v14 = vld [vmem:[%s2687_s6 + $0x3] ss:$0 sm:$0xff] }
 0x5c0   :  { %1181 = vmatpush.bf16.msra.mxu0 %v2021_v38 }
 0x5c1   :  { %1051 = vmatpush.bf16.msrb.mxu3 %v982_v17 }
 0x5c4   :  { %1182 = vmatpush.bf16.msra.mxu0 %v2020_v39 }
 0x5c5   :  { %1052 = vmatpush.bf16.msrb.mxu3 %v981_v22 }
 0x5c8   :  { %1183 = vmatpush.bf16.msra.mxu0 %v2019_v41 }
 0x5c9   :  { %1053 = vmatpush.bf16.msrb.mxu3 %v980_v26 }
 0x5cc   :  { %1184 = vmatpush.bf16.msra.mxu0 %v2018_v42 }
 0x5cd   :  { %1054 = vmatpush.bf16.msrb.mxu3 %v979_v28 }
 0x5d1   :  { %1055 = vmatpush.bf16.msrb.mxu3 %v978_v0  ;;  %v2031_v0 = vld [vmem:[%s2688_s7 + $0x30] sm:$0xff] }
 0x5d2   :  { %1320 = vmatpush.bf16.msra.mxu1 %v2031_v0 }
 0x5d5   :  { %1056 = vmatpush.bf16.msrb.mxu3 %v977_v57 }
 0x5d6   :  { %1321 = vmatpush.bf16.msra.mxu1 %v2030_v1 }
 0x5d9   :  { %1057 = vmatpush.bf16.msrb.mxu3 %v976_v50 }
 0x5da   :  { %1322 = vmatpush.bf16.msra.mxu1 %v2029_v3 }
 0x5dd   :  { %1058 = vmatpush.bf16.msrb.mxu3 %v975_v43  ;;  %v2017_v43 = vld [vmem:[%s2686_s5 + $0xc0] sm:$0xff] }
 0x5de   :  { %1185 = vmatpush.bf16.msra.mxu0 %v2017_v43  ;;  %1323 = vmatpush.bf16.msra.mxu1 %v2028_v4 }
 0x5e0   :  { %1059 = vmatmul.bf16.vlgmr.msrb.gmra.mxu3 %v2009_v29 }
 0x5e2   :  { %1324 = vmatpush.bf16.msra.mxu1 %v2027_v7 }
 0x5e6   :  { %1325 = vmatpush.bf16.msra.mxu1 %v2026_v8  ;;  %v2438_v8 = vld [vmem:[%s2689_s8] ss:$0 sm:$0xff] }
 0x5ea   :  { %1326 = vmatpush.bf16.msra.mxu1 %v2025_v10 }
 0x5f0   :  { %1064 = vmatmul.bf16.gmra.mxu3 %v2010_v30 }
 0x600   :  { %1069 = vmatmul.bf16.gmra.mxu3 %v2011_v31 }
 0x610   :  { %1074 = vmatmul.bf16.gmra.mxu3 %v2012_v32 }
 0x620   :  { %1079 = vmatmul.bf16.gmra.mxu3 %v2013_v33 }
 0x630   :  { %1084 = vmatmul.bf16.gmra.mxu3 %v2014_v35 }
 0x640   :  { %1089 = vmatmul.bf16.gmra.mxu3 %v2015_v40 }
 0x650   :  { %1094 = vmatmul.bf16.gmra.mxu3 %v2016_v44 }
 0x663   :  { %v1060_v45 = vpop.f32.mrf.mxu3 }
 0x66b   :  { %v1062_v46 = vpop.f32.mrf.mxu3 }
 0x66c   :  { %v1100_v47 = vpack.c.bf16 %v1062_v46, %v1060_v45 }
 0x66e   :  { %1186 = vmatmul.bf16.vlgmr.msra.gmra.mxu0 %v1100_v47 }
 0x673   :  { %v1065_v48 = vpop.f32.mrf.mxu3 }
 0x67b   :  { %v1067_v49 = vpop.f32.mrf.mxu3 }
 0x67c   :  { %v1101_v50 = vpack.c.bf16 %v1067_v49, %v1065_v48 }
 0x67e   :  { %1191 = vmatmul.bf16.gmra.mxu0 %v1101_v50 }
 0x683   :  { %v1070_v51 = vpop.f32.mrf.mxu3 }
 0x68b   :  { %v1072_v52 = vpop.f32.mrf.mxu3 }
 0x68c   :  { %v1102_v53 = vpack.c.bf16 %v1072_v52, %v1070_v51 }
 0x68e   :  { %1196 = vmatmul.bf16.gmra.mxu0 %v1102_v53 }
 0x693   :  { %v1075_v54 = vpop.f32.mrf.mxu3 }
 0x69b   :  { %v1077_v55 = vpop.f32.mrf.mxu3 }
 0x69c   :  { %v1103_v56 = vpack.c.bf16 %v1077_v55, %v1075_v54 }
 0x69e   :  { %1201 = vmatmul.bf16.gmra.mxu0 %v1103_v56 }
 0x6a3   :  { %v1080_v57 = vpop.f32.mrf.mxu3 }
 0x6ab   :  { %v1082_v58 = vpop.f32.mrf.mxu3 }
 0x6ac   :  { %v1104_v59 = vpack.c.bf16 %v1082_v58, %v1080_v57 }
 0x6ae   :  { %1206 = vmatmul.bf16.gmra.mxu0 %v1104_v59 }
 0x6b3   :  { %v1085_v60 = vpop.f32.mrf.mxu3 }
 0x6bb   :  { %v1087_v62 = vpop.f32.mrf.mxu3 }
 0x6bc   :  { %v1105_v63 = vpack.c.bf16 %v1087_v62, %v1085_v60 }
 0x6be   :  { %1211 = vmatmul.bf16.gmra.mxu0 %v1105_v63 }
 0x6c3   :  { %v1090_v2 = vpop.f32.mrf.mxu3 }
 0x6cb   :  { %v1092_v5 = vpop.f32.mrf.mxu3 }
 0x6cc   :  { %v1106_v6 = vpack.c.bf16 %v1092_v5, %v1090_v2 }
 0x6ce   :  { %1216 = vmatmul.bf16.gmra.mxu0 %v1106_v6  ;;  %v1368_v6 = vlaneseq }
 0x6d0   :  { %v2433_v7 = vand.u32 127, %v1368_v6 }
 0x6d2   :  { %vm1370_vm1 = vcmp.lt.s32.totalorder %v2433_v7, 16 }
 0x6d3   :  { %v1095_v9 = vpop.f32.mrf.mxu3 }
 0x6db   :  { %v1097_v11 = vpop.f32.mrf.mxu3 }
 0x6dc   :  { %v1107_v12 = vpack.c.bf16 %v1097_v11, %v1095_v9 }
 0x6de   :  { %1221 = vmatmul.bf16.gmra.mxu0 %v1107_v12 }
 0x6eb   :  { %v1187_v13 = vpop.f32.mrf.mxu0 }
 0x6ec   :  { %v1188_v15 = vadd.f32 %v2055_v14, %v1187_v13 }
 0x6ee   :  { %v1227_v18 = vmax.f32 %v1188_v15, 0.0 }
 0x6f3   :  { %v1189_v16 = vpop.f32.mrf.mxu0 }
 0x6f4   :  { %v1190_v17 = vadd.f32 %v2055_v14, %v1189_v16 }
 0x6f6   :  { %v1228_v19 = vmax.f32 %v1190_v17, 0.0 }
 0x6f8   :  { %v1243_v20 = vpack.c.bf16 %v1228_v19, %v1227_v18 }
 0x6fa   :  { %1327 = vmatmul.bf16.vlgmr.msra.gmra.mxu1 %v1243_v20 }
 0x6fb   :  { %v1192_v21 = vpop.f32.mrf.mxu0 }
 0x6fc   :  { %v1193_v22 = vadd.f32 %v2055_v14, %v1192_v21 }
 0x6fe   :  { %v1229_v25 = vmax.f32 %v1193_v22, 0.0 }
 0x703   :  { %v1194_v23 = vpop.f32.mrf.mxu0 }
 0x704   :  { %v1195_v24 = vadd.f32 %v2055_v14, %v1194_v23 }
 0x706   :  { %v1230_v26 = vmax.f32 %v1195_v24, 0.0 }
 0x708   :  { %v1244_v27 = vpack.c.bf16 %v1230_v26, %v1229_v25 }
 0x70a   :  { %1332 = vmatmul.bf16.gmra.mxu1 %v1244_v27 }
 0x70b   :  { %v1197_v28 = vpop.f32.mrf.mxu0 }
 0x70c   :  { %v1198_v29 = vadd.f32 %v2055_v14, %v1197_v28 }
 0x70e   :  { %v1231_v32 = vmax.f32 %v1198_v29, 0.0 }
 0x713   :  { %v1199_v30 = vpop.f32.mrf.mxu0 }
 0x714   :  { %v1200_v31 = vadd.f32 %v2055_v14, %v1199_v30 }
 0x716   :  { %v1232_v33 = vmax.f32 %v1200_v31, 0.0 }
 0x718   :  { %v1245_v34 = vpack.c.bf16 %v1232_v33, %v1231_v32 }
 0x71a   :  { %1337 = vmatmul.bf16.gmra.mxu1 %v1245_v34 }
 0x71b   :  { %v1202_v35 = vpop.f32.mrf.mxu0 }
 0x71c   :  { %v1203_v36 = vadd.f32 %v2055_v14, %v1202_v35 }
 0x71e   :  { %v1233_v39 = vmax.f32 %v1203_v36, 0.0 }
 0x723   :  { %v1204_v37 = vpop.f32.mrf.mxu0 }
 0x724   :  { %v1205_v38 = vadd.f32 %v2055_v14, %v1204_v37 }
 0x726   :  { %v1234_v40 = vmax.f32 %v1205_v38, 0.0 }
 0x728   :  { %v1246_v41 = vpack.c.bf16 %v1234_v40, %v1233_v39 }
 0x72a   :  { %1342 = vmatmul.bf16.gmra.mxu1 %v1246_v41 }
 0x72b   :  { %v1207_v42 = vpop.f32.mrf.mxu0 }
 0x72c   :  { %v1208_v43 = vadd.f32 %v2055_v14, %v1207_v42 }
 0x72e   :  { %v1235_v46 = vmax.f32 %v1208_v43, 0.0 }
 0x733   :  { %v1209_v44 = vpop.f32.mrf.mxu0 }
 0x734   :  { %v1210_v45 = vadd.f32 %v2055_v14, %v1209_v44 }
 0x736   :  { %v1236_v47 = vmax.f32 %v1210_v45, 0.0 }
 0x738   :  { %v1247_v48 = vpack.c.bf16 %v1236_v47, %v1235_v46 }
 0x73a   :  { %1347 = vmatmul.bf16.gmra.mxu1 %v1247_v48 }
 0x73b   :  { %v1212_v49 = vpop.f32.mrf.mxu0 }
 0x73c   :  { %v1213_v50 = vadd.f32 %v2055_v14, %v1212_v49 }
 0x73e   :  { %v1237_v53 = vmax.f32 %v1213_v50, 0.0 }
 0x743   :  { %v1214_v51 = vpop.f32.mrf.mxu0 }
 0x744   :  { %v1215_v52 = vadd.f32 %v2055_v14, %v1214_v51 }
 0x746   :  { %v1238_v54 = vmax.f32 %v1215_v52, 0.0 }
 0x748   :  { %v1248_v55 = vpack.c.bf16 %v1238_v54, %v1237_v53 }
 0x74a   :  { %1352 = vmatmul.bf16.gmra.mxu1 %v1248_v55 }
 0x74b   :  { %v1217_v56 = vpop.f32.mrf.mxu0 }
 0x74c   :  { %v1218_v57 = vadd.f32 %v2055_v14, %v1217_v56 }
 0x74e   :  { %v1239_v60 = vmax.f32 %v1218_v57, 0.0 }
 0x753   :  { %v1219_v58 = vpop.f32.mrf.mxu0 }
 0x754   :  { %v1220_v59 = vadd.f32 %v2055_v14, %v1219_v58 }
 0x756   :  { %v1240_v61 = vmax.f32 %v1220_v59, 0.0 }
 0x758   :  { %v1249_v62 = vpack.c.bf16 %v1240_v61, %v1239_v60 }
 0x75a   :  { %1357 = vmatmul.bf16.gmra.mxu1 %v1249_v62 }
 0x75b   :  { %v1222_v63 = vpop.f32.mrf.mxu0 }
 0x75c   :  { %v1223_v0 = vadd.f32 %v2055_v14, %v1222_v63 }
 0x75e   :  { %v1241_v3 = vmax.f32 %v1223_v0, 0.0 }
 0x763   :  { %v1224_v1 = vpop.f32.mrf.mxu0 }
 0x764   :  { %v1225_v2 = vadd.f32 %v2055_v14, %v1224_v1 }
 0x766   :  { %v1242_v4 = vmax.f32 %v1225_v2, 0.0 }
 0x768   :  { %v1250_v5 = vpack.c.bf16 %v1242_v4, %v1241_v3 }
 0x76a   :  { %1362 = vmatmul.bf16.gmra.mxu1 %v1250_v5 }
 0x777   :  { %v1328_v9 = vpop.f32.mrf.mxu1 }
 0x778   :  { %v1329_v10 = vadd.f32 %v2438_v8, %v1328_v9 }
 0x77a   :  { %v2444_v11 = vsel %vm1370_vm1, %v1329_v10, -1e+30 }
 0x77b   :  { %1387 = vmax.xlane.f32.xlu0 %v2444_v11 }
 0x77f   :  { %v1330_v12 = vpop.f32.mrf.mxu1 }
 0x780   :  { %v1331_v13 = vadd.f32 %v2438_v8, %v1330_v12 }
 0x782   :  { %v2450_v14 = vsel %vm1370_vm1, %v1331_v13, -1e+30 }
 0x783   :  { %1389 = vmax.xlane.f32.xlu0 %v2450_v14 }
 0x787   :  { %v1333_v15 = vpop.f32.mrf.mxu1 }
 0x788   :  { %v1334_v16 = vadd.f32 %v2438_v8, %v1333_v15 }
 0x78a   :  { %v2456_v17 = vsel %vm1370_vm1, %v1334_v16, -1e+30 }
 0x78b   :  { %1391 = vmax.xlane.f32.xlu1 %v2456_v17 }
 0x78f   :  { %v1335_v18 = vpop.f32.mrf.mxu1 }
 0x790   :  { %v1336_v19 = vadd.f32 %v2438_v8, %v1335_v18 }
 0x792   :  { %v2462_v20 = vsel %vm1370_vm1, %v1336_v19, -1e+30 }
 0x793   :  { %1393 = vmax.xlane.f32.xlu1 %v2462_v20 }
 0x797   :  { %v1338_v21 = vpop.f32.mrf.mxu1 }
 0x798   :  { %v1339_v22 = vadd.f32 %v2438_v8, %v1338_v21 }
 0x79a   :  { %v2468_v23 = vsel %vm1370_vm1, %v1339_v22, -1e+30 }
 0x79b   :  { %1395 = vmax.xlane.f32.xlu2 %v2468_v23 }
 0x79f   :  { %v1340_v24 = vpop.f32.mrf.mxu1 }
 0x7a0   :  { %v1341_v25 = vadd.f32 %v2438_v8, %v1340_v24 }
 0x7a2   :  { %v2474_v26 = vsel %vm1370_vm1, %v1341_v25, -1e+30 }
 0x7a3   :  { %1397 = vmax.xlane.f32.xlu2 %v2474_v26 }
 0x7a7   :  { %v1343_v27 = vpop.f32.mrf.mxu1 }
 0x7a8   :  { %v1344_v28 = vadd.f32 %v2438_v8, %v1343_v27 }
 0x7aa   :  { %v2480_v29 = vsel %vm1370_vm1, %v1344_v28, -1e+30 }
 0x7ab   :  { %1399 = vmax.xlane.f32.xlu0 %v2480_v29 }
 0x7af   :  { %v1345_v30 = vpop.f32.mrf.mxu1 }
 0x7b0   :  { %v1346_v31 = vadd.f32 %v2438_v8, %v1345_v30 }
 0x7b2   :  { %v2486_v32 = vsel %vm1370_vm1, %v1346_v31, -1e+30 }
 0x7b3   :  { %1401 = vmax.xlane.f32.xlu1 %v2486_v32 }
 0x7b7   :  { %v1348_v33 = vpop.f32.mrf.mxu1 }
 0x7b8   :  { %v1349_v34 = vadd.f32 %v2438_v8, %v1348_v33 }
 0x7ba   :  { %v2492_v35 = vsel %vm1370_vm1, %v1349_v34, -1e+30 }
 0x7bb   :  { %1403 = vmax.xlane.f32.xlu2 %v2492_v35 }
 0x7bf   :  { %v1350_v36 = vpop.f32.mrf.mxu1 }
 0x7c0   :  { %v1351_v37 = vadd.f32 %v2438_v8, %v1350_v36 }
 0x7c2   :  { %v2498_v38 = vsel %vm1370_vm1, %v1351_v37, -1e+30 }
 0x7c3   :  { %1405 = vmax.xlane.f32.xlu0 %v2498_v38 }
 0x7c7   :  { %v1353_v39 = vpop.f32.mrf.mxu1 }
 0x7c8   :  { %v1354_v40 = vadd.f32 %v2438_v8, %v1353_v39 }
 0x7ca   :  { %v2504_v41 = vsel %vm1370_vm1, %v1354_v40, -1e+30 }
 0x7cb   :  { %1407 = vmax.xlane.f32.xlu1 %v2504_v41 }
 0x7cf   :  { %v1355_v42 = vpop.f32.mrf.mxu1 }
 0x7d0   :  { %v1356_v43 = vadd.f32 %v2438_v8, %v1355_v42 }
 0x7d2   :  { %v2510_v44 = vsel %vm1370_vm1, %v1356_v43, -1e+30 }
 0x7d3   :  { %1409 = vmax.xlane.f32.xlu2 %v2510_v44 }
 0x7d7   :  { %v1358_v45 = vpop.f32.mrf.mxu1 }
 0x7d8   :  { %v1359_v46 = vadd.f32 %v2438_v8, %v1358_v45 }
 0x7da   :  { %v2516_v47 = vsel %vm1370_vm1, %v1359_v46, -1e+30 }
 0x7db   :  { %1411 = vmax.xlane.f32.xlu0 %v2516_v47 }
 0x7df   :  { %v1360_v48 = vpop.f32.mrf.mxu1 }
 0x7e0   :  { %v1361_v49 = vadd.f32 %v2438_v8, %v1360_v48 }
 0x7e2   :  { %v2522_v50 = vsel %vm1370_vm1, %v1361_v49, -1e+30 }
 0x7e3   :  { %1413 = vmax.xlane.f32.xlu1 %v2522_v50 }
 0x7e7   :  { %v1363_v51 = vpop.f32.mrf.mxu1 }
 0x7e8   :  { %v1364_v52 = vadd.f32 %v2438_v8, %v1363_v51 }
 0x7ea   :  { %v2528_v53 = vsel %vm1370_vm1, %v1364_v52, -1e+30 }
 0x7eb   :  { %1415 = vmax.xlane.f32.xlu2 %v2528_v53 }
 0x7ee   :  { %v2531_v54 = vpop.xlane.xlu0 %1387 }
 0x7ef   :  { %v1419_v55 = vsub.f32 %v2444_v11, %v2531_v54  ;;  %v1365_v56 = vpop.f32.mrf.mxu1 }
 0x7f0   :  { %v1366_v57 = vadd.f32 %v2438_v8, %v1365_v56 }
 0x7f1   :  { %v1435_v58 = vmul.f32 1.442695, %v1419_v55 }
 0x7f2   :  { %v2538_v59 = vsel %vm1370_vm1, %v1366_v57, -1e+30 }
 0x7f3   :  { %2057 = vpow2.f32 %v1435_v58  ;;  %1417 = vmax.xlane.f32.xlu0 %v2538_v59 }
 0x7f6   :  { %v2541_v60 = vpop.xlane.xlu0 %1389 }
 0x7f7   :  { %v1420_v61 = vsub.f32 %v2450_v14, %v2541_v60 }
 0x7f9   :  { %v2058_v62 = vpop.eup %2057  ;;  %v1437_v63 = vmul.f32 1.442695, %v1420_v61 }
 0x7fa   :  { %1467 = vadd.xlane.f32.xlu1 %v2058_v62 }
 0x7fb   :  { %2059 = vpow2.f32 %v1437_v63 }
 0x7fe   :  { %v2545_v0 = vpop.xlane.xlu1 %1391 }
 0x7ff   :  { %v1421_v1 = vsub.f32 %v2456_v17, %v2545_v0 }
 0x801   :  { %v2060_v2 = vpop.eup %2059  ;;  %v1439_v3 = vmul.f32 1.442695, %v1421_v1 }
 0x802   :  { %1469 = vadd.xlane.f32.xlu2 %v2060_v2 }
 0x803   :  { %2061 = vpow2.f32 %v1439_v3 }
 0x806   :  { %v2549_v4 = vpop.xlane.xlu1 %1393 }
 0x807   :  { %v1422_v5 = vsub.f32 %v2462_v20, %v2549_v4 }
 0x809   :  { %v2062_v6 = vpop.eup %2061  ;;  %v1441_v7 = vmul.f32 1.442695, %v1422_v5 }
 0x80a   :  { %1471 = vadd.xlane.f32.xlu0 %v2062_v6 }
 0x80b   :  { %2063 = vpow2.f32 %v1441_v7 }
 0x80e   :  { %v2553_v8 = vpop.xlane.xlu2 %1395 }
 0x80f   :  { %v1423_v9 = vsub.f32 %v2468_v23, %v2553_v8 }
 0x811   :  { %v2064_v10 = vpop.eup %2063  ;;  %v1443_v12 = vmul.f32 1.442695, %v1423_v9 }
 0x812   :  { %1473 = vadd.xlane.f32.xlu1 %v2064_v10 }
 0x813   :  { %2065 = vpow2.f32 %v1443_v12 }
 0x816   :  { %v2557_v13 = vpop.xlane.xlu2 %1397 }
 0x817   :  { %v1424_v15 = vsub.f32 %v2474_v26, %v2557_v13 }
 0x819   :  { %v2066_v16 = vpop.eup %2065  ;;  %v1445_v18 = vmul.f32 1.442695, %v1424_v15 }
 0x81a   :  { %1475 = vadd.xlane.f32.xlu2 %v2066_v16 }
 0x81b   :  { %2067 = vpow2.f32 %v1445_v18 }
 0x81e   :  { %v2561_v19 = vpop.xlane.xlu0 %1399 }
 0x81f   :  { %v1425_v21 = vsub.f32 %v2480_v29, %v2561_v19 }
 0x821   :  { %v2068_v22 = vpop.eup %2067  ;;  %v1447_v24 = vmul.f32 1.442695, %v1425_v21 }
 0x822   :  { %1477 = vadd.xlane.f32.xlu0 %v2068_v22 }
 0x823   :  { %2069 = vpow2.f32 %v1447_v24 }
 0x826   :  { %v2565_v25 = vpop.xlane.xlu1 %1401 }
 0x827   :  { %v1426_v27 = vsub.f32 %v2486_v32, %v2565_v25 }
 0x829   :  { %v2070_v28 = vpop.eup %2069  ;;  %v1449_v30 = vmul.f32 1.442695, %v1426_v27 }
 0x82a   :  { %1479 = vadd.xlane.f32.xlu1 %v2070_v28 }
 0x82b   :  { %2071 = vpow2.f32 %v1449_v30 }
 0x82e   :  { %v2569_v31 = vpop.xlane.xlu2 %1403 }
 0x82f   :  { %v1427_v33 = vsub.f32 %v2492_v35, %v2569_v31 }
 0x831   :  { %v2072_v34 = vpop.eup %2071  ;;  %v1451_v36 = vmul.f32 1.442695, %v1427_v33 }
 0x832   :  { %1481 = vadd.xlane.f32.xlu2 %v2072_v34 }
 0x833   :  { %2073 = vpow2.f32 %v1451_v36 }
 0x836   :  { %v2573_v37 = vpop.xlane.xlu0 %1405 }
 0x837   :  { %v1428_v39 = vsub.f32 %v2498_v38, %v2573_v37 }
 0x839   :  { %v2074_v40 = vpop.eup %2073  ;;  %v1453_v42 = vmul.f32 1.442695, %v1428_v39 }
 0x83a   :  { %1483 = vadd.xlane.f32.xlu0 %v2074_v40 }
 0x83b   :  { %2075 = vpow2.f32 %v1453_v42 }
 0x83e   :  { %v2577_v43 = vpop.xlane.xlu1 %1407 }
 0x83f   :  { %v1429_v45 = vsub.f32 %v2504_v41, %v2577_v43 }
 0x841   :  { %v2076_v46 = vpop.eup %2075  ;;  %v1455_v48 = vmul.f32 1.442695, %v1429_v45 }
 0x842   :  { %1485 = vadd.xlane.f32.xlu1 %v2076_v46 }
 0x843   :  { %2077 = vpow2.f32 %v1455_v48 }
 0x846   :  { %v2581_v49 = vpop.xlane.xlu2 %1409 }
 0x847   :  { %v1430_v51 = vsub.f32 %v2510_v44, %v2581_v49 }
 0x849   :  { %v2078_v52 = vpop.eup %2077  ;;  %v1457_v55 = vmul.f32 1.442695, %v1430_v51 }
 0x84a   :  { %1487 = vadd.xlane.f32.xlu2 %v2078_v52 }
 0x84b   :  { %2079 = vpow2.f32 %v1457_v55 }
 0x84e   :  { %v2585_v56 = vpop.xlane.xlu0 %1411 }
 0x84f   :  { %v1431_v57 = vsub.f32 %v2516_v47, %v2585_v56 }
 0x851   :  { %v2080_v58 = vpop.eup %2079  ;;  %v1459_v61 = vmul.f32 1.442695, %v1431_v57 }
 0x852   :  { %1489 = vadd.xlane.f32.xlu0 %v2080_v58 }
 0x853   :  { %2081 = vpow2.f32 %v1459_v61 }
 0x856   :  { %v2589_v62 = vpop.xlane.xlu1 %1413 }
 0x857   :  { %v1432_v63 = vsub.f32 %v2522_v50, %v2589_v62 }
 0x859   :  { %v2082_v1 = vpop.eup %2081  ;;  %v1461_v2 = vmul.f32 1.442695, %v1432_v63 }
 0x85a   :  { %1491 = vadd.xlane.f32.xlu1 %v2082_v1 }
 0x85b   :  { %2083 = vpow2.f32 %v1461_v2 }
 0x85e   :  { %v2593_v3 = vpop.xlane.xlu2 %1415 }
 0x85f   :  { %v1433_v5 = vsub.f32 %v2528_v53, %v2593_v3 }
 0x861   :  { %v2084_v6 = vpop.eup %2083  ;;  %v1463_v7 = vmul.f32 1.442695, %v1433_v5 }
 0x862   :  { %1493 = vadd.xlane.f32.xlu2 %v2084_v6 }
 0x863   :  { %2085 = vpow2.f32 %v1463_v7 }
 0x866   :  { %v2597_v9 = vpop.xlane.xlu0 %1417 }
 0x867   :  { %v1434_v10 = vsub.f32 %v2538_v59, %v2597_v9 }
 0x869   :  { %v2086_v12 = vpop.eup %2085  ;;  %v1465_v15 = vmul.f32 1.442695, %v1434_v10 }
 0x86a   :  { %1495 = vadd.xlane.f32.xlu0 %v2086_v12 }
 0x86b   :  { %2087 = vpow2.f32 %v1465_v15 }
 0x86d   :  { %v1468_v16 = vpop.xlane.xlu1 %1467 }
 0x86e   :  { %2089 = vlog2.f32 %v1468_v16 }
 0x871   :  { %v2088_v18 = vpop.eup %2087 }
 0x872   :  { %1497 = vadd.xlane.f32.xlu1 %v2088_v18 }
 0x874   :  { %v2090_v21 = vpop.eup %2089 }
 0x875   :  { %v1500_v22 = vmul.f32 0.6931472, %v2090_v21  ;;  %v1470_v24 = vpop.xlane.xlu2 %1469 }
 0x876   :  { %2091 = vlog2.f32 %v1470_v24 }
 0x877   :  { %v1531_v27 = vadd.f32 %v1500_v22, %v2531_v54 }
 0x879   :  { %v1547_v28 = vsub.f32 %v2444_v11, %v1531_v27 }
 0x87b   :  { %1563 = vst [vmem:[%s2690_s9] sm:$0xff] %v1547_v28 }
 0x87c   :  { %v2092_v30 = vpop.eup %2091 }
 0x87d   :  { %v1502_v33 = vmul.f32 0.6931472, %v2092_v30  ;;  %v1472_v34 = vpop.xlane.xlu0 %1471 }
 0x87e   :  { %2093 = vlog2.f32 %v1472_v34 }
 0x87f   :  { %v1532_v36 = vadd.f32 %v1502_v33, %v2541_v60 }
 0x881   :  { %v1548_v39 = vsub.f32 %v2450_v14, %v1532_v36 }
 0x883   :  { %1564 = vst [vmem:[%s2690_s9 + $0x8] sm:$0xff] %v1548_v39 }
 0x884   :  { %v2094_v40 = vpop.eup %2093 }
 0x885   :  { %v1504_v54 = vmul.f32 0.6931472, %v2094_v40  ;;  %v1474_v42 = vpop.xlane.xlu1 %1473 }
 0x886   :  { %2095 = vlog2.f32 %v1474_v42 }
 0x887   :  { %v1533_v11 = vadd.f32 %v1504_v54, %v2545_v0 }
 0x889   :  { %v1549_v45 = vsub.f32 %v2456_v17, %v1533_v11 }
 0x88b   :  { %1565 = vst [vmem:[%s2690_s9 + $0x10] sm:$0xff] %v1549_v45 }
 0x88c   :  { %v2096_v46 = vpop.eup %2095 }
 0x88d   :  { %v1506_v60 = vmul.f32 0.6931472, %v2096_v46  ;;  %v1476_v48 = vpop.xlane.xlu2 %1475 }
 0x88e   :  { %2097 = vlog2.f32 %v1476_v48 }
 0x88f   :  { %v1534_v14 = vadd.f32 %v1506_v60, %v2549_v4 }
 0x891   :  { %v1550_v51 = vsub.f32 %v2462_v20, %v1534_v14 }
 0x893   :  { %1566 = vst [vmem:[%s2690_s9 + $0x18] sm:$0xff] %v1550_v51 }
 0x894   :  { %v2098_v52 = vpop.eup %2097 }
 0x895   :  { %v1508_v0 = vmul.f32 0.6931472, %v2098_v52  ;;  %v1478_v55 = vpop.xlane.xlu0 %1477 }
 0x896   :  { %2099 = vlog2.f32 %v1478_v55 }
 0x897   :  { %v1535_v17 = vadd.f32 %v1508_v0, %v2553_v8 }
 0x899   :  { %v1551_v57 = vsub.f32 %v2468_v23, %v1535_v17 }
 0x89b   :  { %1567 = vst [vmem:[%s2690_s9 + $0x20] sm:$0xff] %v1551_v57 }
 0x89c   :  { %v2100_v58 = vpop.eup %2099 }
 0x89d   :  { %v1510_v4 = vmul.f32 0.6931472, %v2100_v58  ;;  %v1480_v61 = vpop.xlane.xlu1 %1479 }
 0x89e   :  { %2101 = vlog2.f32 %v1480_v61 }
 0x89f   :  { %v1536_v20 = vadd.f32 %v1510_v4, %v2557_v13 }
 0x8a1   :  { %v1552_v63 = vsub.f32 %v2474_v26, %v1536_v20 }
 0x8a3   :  { %1568 = vst [vmem:[%s2690_s9 + $0x28] sm:$0xff] %v1552_v63 }
 0x8a4   :  { %v2102_v1 = vpop.eup %2101 }
 0x8a5   :  { %v1512_v8 = vmul.f32 0.6931472, %v2102_v1  ;;  %v1482_v2 = vpop.xlane.xlu2 %1481 }
 0x8a6   :  { %2103 = vlog2.f32 %v1482_v2 }
 0x8a7   :  { %v1537_v23 = vadd.f32 %v1512_v8, %v2561_v19 }
 0x8a9   :  { %v1553_v5 = vsub.f32 %v2480_v29, %v1537_v23 }
 0x8ab   :  { %1569 = vst [vmem:[%s2690_s9 + $0x30] sm:$0xff] %v1553_v5 }
 0x8ac   :  { %v2104_v6 = vpop.eup %2103 }
 0x8ad   :  { %v1514_v13 = vmul.f32 0.6931472, %v2104_v6  ;;  %v1484_v7 = vpop.xlane.xlu0 %1483 }
 0x8ae   :  { %2105 = vlog2.f32 %v1484_v7 }
 0x8af   :  { %v1538_v26 = vadd.f32 %v1514_v13, %v2565_v25 }
 0x8b1   :  { %v1554_v10 = vsub.f32 %v2486_v32, %v1538_v26 }
 0x8b3   :  { %1570 = vst [vmem:[%s2690_s9 + $0x38] sm:$0xff] %v1554_v10 }
 0x8b4   :  { %v2106_v12 = vpop.eup %2105 }
 0x8b5   :  { %v1516_v19 = vmul.f32 0.6931472, %v2106_v12  ;;  %v1486_v15 = vpop.xlane.xlu1 %1485 }
 0x8b6   :  { %2107 = vlog2.f32 %v1486_v15 }
 0x8b7   :  { %v1539_v29 = vadd.f32 %v1516_v19, %v2569_v31 }
 0x8b9   :  { %v1555_v16 = vsub.f32 %v2492_v35, %v1539_v29 }
 0x8bb   :  { %1571 = vst [vmem:[%s2690_s9 + $0x40] sm:$0xff] %v1555_v16 }
 0x8bc   :  { %v2108_v18 = vpop.eup %2107 }
 0x8bd   :  { %v1518_v25 = vmul.f32 0.6931472, %v2108_v18  ;;  %v1488_v21 = vpop.xlane.xlu2 %1487 }
 0x8be   :  { %2109 = vlog2.f32 %v1488_v21 }
 0x8bf   :  { %v1540_v32 = vadd.f32 %v1518_v25, %v2573_v37 }
 0x8c1   :  { %v1556_v22 = vsub.f32 %v2498_v38, %v1540_v32 }
 0x8c3   :  { %1572 = vst [vmem:[%s2690_s9 + $0x48] sm:$0xff] %v1556_v22 }
 0x8c4   :  { %v2110_v24 = vpop.eup %2109 }
 0x8c5   :  { %v1520_v31 = vmul.f32 0.6931472, %v2110_v24  ;;  %v1490_v27 = vpop.xlane.xlu0 %1489 }
 0x8c6   :  { %2111 = vlog2.f32 %v1490_v27 }
 0x8c7   :  { %v1541_v35 = vadd.f32 %v1520_v31, %v2577_v43 }
 0x8c9   :  { %v1557_v28 = vsub.f32 %v2504_v41, %v1541_v35 }
 0x8cb   :  { %1573 = vst [vmem:[%s2690_s9 + $0x50] sm:$0xff] %v1557_v28 }
 0x8cc   :  { %v2112_v30 = vpop.eup %2111 }
 0x8cd   :  { %v1522_v37 = vmul.f32 0.6931472, %v2112_v30  ;;  %v1492_v33 = vpop.xlane.xlu1 %1491 }
 0x8ce   :  { %2113 = vlog2.f32 %v1492_v33 }
 0x8cf   :  { %v1542_v38 = vadd.f32 %v1522_v37, %v2581_v49 }
 0x8d1   :  { %v1558_v34 = vsub.f32 %v2510_v44, %v1542_v38 }
 0x8d3   :  { %1574 = vst [vmem:[%s2690_s9 + $0x58] sm:$0xff] %v1558_v34 }
 0x8d4   :  { %v2114_v36 = vpop.eup %2113 }
 0x8d5   :  { %v1524_v43 = vmul.f32 0.6931472, %v2114_v36  ;;  %v1494_v39 = vpop.xlane.xlu2 %1493 }
 0x8d6   :  { %2115 = vlog2.f32 %v1494_v39 }
 0x8d7   :  { %v1543_v41 = vadd.f32 %v1524_v43, %v2585_v56 }
 0x8d9   :  { %v1559_v40 = vsub.f32 %v2516_v47, %v1543_v41 }
 0x8db   :  { %1575 = vst [vmem:[%s2690_s9 + $0x60] sm:$0xff] %v1559_v40 }
 0x8dc   :  { %v2116_v54 = vpop.eup %2115 }
 0x8dd   :  { %v1526_v49 = vmul.f32 0.6931472, %v2116_v54  ;;  %v1496_v42 = vpop.xlane.xlu0 %1495 }
 0x8de   :  { %2117 = vlog2.f32 %v1496_v42 }
 0x8df   :  { %v1544_v44 = vadd.f32 %v1526_v49, %v2589_v62 }
 0x8e1   :  { %v1560_v11 = vsub.f32 %v2522_v50, %v1544_v44 }
 0x8e3   :  { %1576 = vst [vmem:[%s2690_s9 + $0x68] sm:$0xff] %v1560_v11 }
 0x8e4   :  { %v2118_v45 = vpop.eup %2117 }
 0x8e5   :  { %v1528_v56 = vmul.f32 0.6931472, %v2118_v45  ;;  %v1498_v46 = vpop.xlane.xlu1 %1497 }
 0x8e6   :  { %2119 = vlog2.f32 %v1498_v46 }
 0x8e7   :  { %v1545_v47 = vadd.f32 %v1528_v56, %v2593_v3 }
 0x8e9   :  { %v1561_v60 = vsub.f32 %v2528_v53, %v1545_v47 }
 0x8eb   :  { %1577 = vst [vmem:[%s2690_s9 + $0x70] sm:$0xff] %v1561_v60 }
 0x8ec   :  { %v2120_v48 = vpop.eup %2119 }
 0x8ed   :  { %v1530_v62 = vmul.f32 0.6931472, %v2120_v48 }
 0x8ef   :  { %v1546_v50 = vadd.f32 %v1530_v62, %v2597_v9 }
 0x8f1   :  { %v1562_v14 = vsub.f32 %v2538_v59, %v1546_v50 }
 0x8f3   :  { %1578 = vst [vmem:[%s2690_s9 + $0x78] sm:$0xff] %v1562_v14 }

</bundles_post_ra>
